<compile_context>
chip_gen: v7x
topology: tpu7x:2x2x1
jax: 0.10.0
libtpu: 0.0.40
codegen_flags: <defaults>
</compile_context>

<pallas_src>
import functools

import numpy as np
import jax
import jax.numpy as jnp
from jax.experimental import pallas as pl
from jax.experimental.pallas import tpu as pltpu  # noqa: F401  (kept for TPU backend)


def _silu(x):
    return x * jax.nn.sigmoid(x)


# ----------------------------------------------------------------------------
# Single fused kernel: node_enc -> n_layers x EGNN -> node_dec -> masked
# graph reduction -> graph_dec -> L2-normalize.
# ----------------------------------------------------------------------------
def fused_encoder_kernel(feats_ref, G_ref, rd_ref, me_ref, msk_ref,
                         we_ref, be_ref,
                         w1i_ref, w1j_ref, w1d_ref, b1_ref,
                         w2_ref, b2_ref,
                         w3a_ref, w3b_ref, b3_ref,
                         w4_ref, b4_ref,
                         wd1_ref, bd1_ref, wd2_ref, bd2_ref,
                         wg1_ref, bg1_ref, wg2_ref, bg2_ref,
                         out_ref, *, reduce_mean, do_normalize, eps):
    B, N, _ = msk_ref.shape            # mask is [B, N, 1]
    K = G_ref.shape[0]                 # neighbors per node
    L = w1i_ref.shape[0]               # number of EGNN layers
    He = w1i_ref.shape[2]
    M = w2_ref.shape[2]
    D = we_ref.shape[1]

    def dot(a, b):
        return jnp.dot(a, b, preferred_element_type=jnp.float32)

    msk = msk_ref[...]                                       # [B, N, 1]

    # ---- node_enc (batch folded into rows) ----
    x = dot(feats_ref[...], we_ref[...]) + be_ref[...]       # [B*N, D]

    # ---- EGNN layers, statically unrolled; x never leaves on-chip memory ----
    for l in range(L):
        # project once, gather the small He-dim projections (project-then-gather)
        p_i = (dot(x, w1i_ref[l]) + b1_ref[l]).reshape(B, N, He)   # b1 folded in
        p_all = dot(x, w1j_ref[l]).reshape(B, N, He)
        w1d = w1d_ref[l]                                           # [1, He]

        m_i = jnp.zeros((B, N, M), jnp.float32)
        for k in range(K):                                         # static K
            # neighbor gather as a tiny one-hot batched matmul: [B,N,N]@[B,N,He]
            p_j = jnp.einsum('bnm,bmh->bnh', G_ref[k], p_all,
                             preferred_element_type=jnp.float32)   # [B, N, He]
            e = _silu(p_i + p_j + rd_ref[k] * w1d)                 # [B, N, He]
            mk = _silu(dot(e.reshape(B * N, He), w2_ref[l]) + b2_ref[l])
            m_i = m_i + mk.reshape(B, N, M) * me_ref[k]            # masked edge sum

        # node MLP + residual (split weights == concat([feats|m_i]) @ W3)
        h = _silu(dot(x, w3a_ref[l]) + dot(m_i.reshape(B * N, M), w3b_ref[l])
                  + b3_ref[l])
        x = dot(h, w4_ref[l]) + b4_ref[l] + x                      # [B*N, D]

    # ---- node_dec ----
    h = _silu(dot(x, wd1_ref[...]) + bd1_ref[...])
    h = dot(h, wd2_ref[...]) + bd2_ref[...]                        # [B*N, D]

    # ---- masked graph reduction over residues ----
    g = jnp.sum(h.reshape(B, N, D) * msk, axis=1)                  # [B, D]
    if reduce_mean:
        g = g / jnp.sum(msk, axis=1)

    # ---- graph_dec ----
    g = _silu(dot(g, wg1_ref[...]) + bg1_ref[...])
    out = dot(g, wg2_ref[...]) + bg2_ref[...]                      # [B, E]

    if do_normalize:
        nrm = jnp.sqrt(jnp.sum(out * out, axis=-1, keepdims=True))
        out = out / jnp.maximum(nrm, eps)
    out_ref[...] = out


# ----------------------------------------------------------------------------
# Plain-JAX neighbor selection — layer invariant, computed exactly once.
# ----------------------------------------------------------------------------
def neighbor_prep(coors, mask, adj_mat, num_nearest):
    B, N, _ = coors.shape
    rel = coors[:, :, None, :] - coors[:, None, :, :]              # [B,N,N,3]
    rel_dist = jnp.sum(rel * rel, axis=-1)                         # [B,N,N]

    rank_mask = mask[:, :, None] & mask[:, None, :]
    ranking = jnp.where(rank_mask, rel_dist, jnp.inf)              # +inf, not 1e5
    self_mask = jnp.eye(N, dtype=bool)[None]
    adj = jnp.where(self_mask, False, adj_mat)
    ranking = jnp.where(self_mask, -1.0, ranking)
    ranking = jnp.where(adj, 0.0, ranking)

    neg_vals, nbhd_idx = jax.lax.top_k(-ranking, num_nearest)      # smallest-k
    nbhd_mask = (-neg_vals) <= 0.0                                 # valid_radius=0

    rd_sel = jnp.take_along_axis(rel_dist, nbhd_idx, axis=2)       # [B,N,K]
    bidx = jnp.arange(B)[:, None, None]
    mask_j = mask[bidx, nbhd_idx]                                  # [B,N,K]
    edge_mask = (mask[:, :, None] & mask_j & nbhd_mask).astype(jnp.float32)

    # K-major layouts so the kernel only ever slices a static leading axis.
    G = jax.nn.one_hot(nbhd_idx, N, dtype=jnp.float32)             # [B,N,K,N]
    G = jnp.transpose(G, (2, 0, 1, 3))                             # [K,B,N,N]
    rd = jnp.transpose(rd_sel, (2, 0, 1))[..., None]               # [K,B,N,1]
    me = jnp.transpose(edge_mask, (2, 0, 1))[..., None]            # [K,B,N,1]
    return G, rd, me


# ----------------------------------------------------------------------------
# Full Model_0 forward (one pallas_call).
# ----------------------------------------------------------------------------
def model_forward(params, feats, coors, mask, adj_mat, *, num_nearest,
                  reduce_mean, do_normalize, eps):
    B, N, F = feats.shape
    E = params['graph_dec_w2'].shape[1]

    G, rd, me = neighbor_prep(coors, mask, adj_mat, num_nearest)
    msk = mask.astype(jnp.float32)[..., None]                      # [B,N,1]
    lp = params['layers']

    kern = functools.partial(fused_encoder_kernel,
                             reduce_mean=reduce_mean,
                             do_normalize=do_normalize, eps=eps)

    # grid=() -> one kernel invocation; every operand is a full-array VMEM
    # block, weights are DMA'd exactly once.  Overhead-bound workload, so we
    # intentionally run single-TensorCore even on v7x (no grid axis).
    return pl.pallas_call(
        kern,
        out_shape=jax.ShapeDtypeStruct((B, E), jnp.float32),
    )(feats.reshape(B * N, F), G, rd, me, msk,
      params['node_enc_w'], params['node_enc_b'],
      lp['w1i'], lp['w1j'], lp['w1d'], lp['b1'],
      lp['w2'], lp['b2'],
      lp['w3a'], lp['w3b'], lp['b3'],
      lp['w4'], lp['b4'],
      params['node_dec_w1'], params['node_dec_b1'],
      params['node_dec_w2'], params['node_dec_b2'],
      params['graph_dec_w1'], params['graph_dec_b1'],
      params['graph_dec_w2'], params['graph_dec_b2'])


# ----------------------------------------------------------------------------
# Pure-JAX reference (mirrors the PyTorch forward) for a correctness check.
# ----------------------------------------------------------------------------
def reference_forward(params, feats, coors, mask, adj_mat, num_nearest, *,
                      reduce_mean, do_normalize, eps):
    B, N, _ = feats.shape
    lp = params['layers']
    L = lp['w1i'].shape[0]

    x = jnp.dot(feats, params['node_enc_w']) + params['node_enc_b']

    rel = coors[:, :, None, :] - coors[:, None, :, :]
    rel_dist = jnp.sum(rel * rel, axis=-1)
    rank_mask = mask[:, :, None] & mask[:, None, :]
    ranking = jnp.where(rank_mask, rel_dist, jnp.inf)
    self_mask = jnp.eye(N, dtype=bool)[None]
    adj = jnp.where(self_mask, False, adj_mat)
    ranking = jnp.where(self_mask, -1.0, ranking)
    ranking = jnp.where(adj, 0.0, ranking)
    neg_vals, nbhd_idx = jax.lax.top_k(-ranking, num_nearest)
    nbhd_mask = (-neg_vals) <= 0.0
    rd_sel = jnp.take_along_axis(rel_dist, nbhd_idx, axis=2)
    bidx = jnp.arange(B)[:, None, None]
    mask_j = mask[bidx, nbhd_idx]
    edge_mask = (mask[:, :, None] & mask_j & nbhd_mask).astype(jnp.float32)

    for l in range(L):
        fj = x[bidx, nbhd_idx]                                     # [B,N,K,D]
        e = jax.nn.silu(jnp.dot(x, lp['w1i'][l])[:, :, None, :]
                        + jnp.einsum('bnkd,dh->bnkh', fj, lp['w1j'][l])
                        + rd_sel[..., None] * lp['w1d'][l]
                        + lp['b1'][l])
        m_ij = jax.nn.silu(jnp.einsum('bnkh,hm->bnkm', e, lp['w2'][l])
                           + lp['b2'][l])
        m_ij = m_ij * edge_mask[..., None]
        m_i = jnp.sum(m_ij, axis=2)                                # [B,N,M]
        h = jax.nn.silu(jnp.dot(x, lp['w3a'][l]) + jnp.dot(m_i, lp['w3b'][l])
                        + lp['b3'][l])
        x = jnp.dot(h, lp['w4'][l]) + lp['b4'][l] + x

    h = jax.nn.silu(jnp.dot(x, params['node_dec_w1']) + params['node_dec_b1'])
    h = jnp.dot(h, params['node_dec_w2']) + params['node_dec_b2']
    mf = mask.astype(jnp.float32)
    g = jnp.sum(h * mf[..., None], axis=1)
    if reduce_mean:
        g = g / jnp.sum(mf, axis=-1, keepdims=True)
    g = jax.nn.silu(jnp.dot(g, params['graph_dec_w1']) + params['graph_dec_b1'])
    out = jnp.dot(g, params['graph_dec_w2']) + params['graph_dec_b2']
    if do_normalize:
        nrm = jnp.sqrt(jnp.sum(out * out, axis=1, keepdims=True))
        out = out / jnp.maximum(nrm, eps)
    return out


# ----------------------------------------------------------------------------
# Deterministic synthetic parameter init (EGNN linears use std=init_eps=1e-3,
# mirroring EGNN.init_).  Per-layer weights are stacked along a leading
# layer axis so the fused kernel takes a fixed, small argument list.
# ----------------------------------------------------------------------------
def init_params(key, F, D, He, M, E, n_layers, init_eps=1e-3):
    keys = iter(jax.random.split(key, 16 + 8 * n_layers))

    def W(shape, std):
        return std * jax.random.normal(next(keys), shape, dtype=jnp.float32)

    params = {
        'node_enc_w': W((F, D), 1.0 / np.sqrt(F)),
        'node_enc_b': W((1, D), 0.02),
        'node_dec_w1': W((D, D), 1.0 / np.sqrt(D)),
        'node_dec_b1': W((1, D), 0.02),
        'node_dec_w2': W((D, D), 1.0 / np.sqrt(D)),
        'node_dec_b2': W((1, D), 0.02),
        'graph_dec_w1': W((D, D), 1.0 / np.sqrt(D)),
        'graph_dec_b1': W((1, D), 0.02),
        'graph_dec_w2': W((D, E), 1.0 / np.sqrt(D)),
        'graph_dec_b2': W((1, E), 0.02),
    }
    layers = []
    for _ in range(n_layers):
        w1 = W((2 * D + 1, He), init_eps)   # edge_mlp linear1 ([f_i|f_j|rel_dist])
        w3 = W((D + M, 2 * D), init_eps)    # node_mlp linear1 ([feats|m_i])
        layers.append({
            'w1i': w1[:D], 'w1j': w1[D:2 * D], 'w1d': w1[2 * D:],
            'b1': W((1, He), 0.02),
            'w2': W((He, M), init_eps), 'b2': W((1, M), 0.02),
            'w3a': w3[:D], 'w3b': w3[D:], 'b3': W((1, 2 * D), 0.02),
            'w4': W((2 * D, D), init_eps), 'b4': W((1, D), 0.02),
        })
    params['layers'] = {k: jnp.stack([lyr[k] for lyr in layers])
                        for k in layers[0]}
    return params


if __name__ == "__main__":
    B, N, F = 2, 8, 8              # batch, residues, feature_dim
    D, He, M, E = 32, 16, 16, 16   # hidden_dim, hidden_edge_dim, m_dim, embedding
    n_layers = 2

    key = jax.random.PRNGKey(0)
    k_feat, k_coor, k_param = jax.random.split(key, 3)

    feats = jax.random.normal(k_feat, (B, N, F), dtype=jnp.float32)
    coors = jax.random.normal(k_coor, (B, N, 3), dtype=jnp.float32)
    mask = jnp.ones((B, N), dtype=bool).at[1, 6:].set(False)   # padded tail

    # chain adjacency: |i-j| <= 2 (includes self, like the PyTorch input)
    idx = np.arange(N)
    adj_np = np.abs(idx[:, None] - idx[None, :]) <= 2
    adj_mat = jnp.asarray(np.broadcast_to(adj_np, (B, N, N)))

    # host-side num_nearest, matching torch's .item() (data-dependent static)
    num_nearest = int(np.asarray(adj_mat, dtype=np.float32).sum(-1).max())

    params = init_params(k_param, F, D, He, M, E, n_layers)

    fwd = jax.jit(functools.partial(
        model_forward, num_nearest=num_nearest,
        reduce_mean=False,      # reduce='sum'
        do_normalize=True,      # F.normalize(dim=1, eps=eps)
        eps=1e-8))
    out = fwd(params, feats, coors, mask, adj_mat)
    out = jax.block_until_ready(out)

    with jax.default_matmul_precision("highest"):
        ref = reference_forward(params, feats, coors, mask, adj_mat,
                                num_nearest, reduce_mean=False,
                                do_normalize=True, eps=1e-8)
    ref = jax.block_until_ready(ref)

    assert out.shape == (B, E)
    assert bool(jnp.all(jnp.isfinite(out)))
    assert bool(jnp.allclose(out, ref, rtol=1e-2, atol=2e-3)), \
        float(jnp.max(jnp.abs(out - ref)))
    print("KERNEL_OK")
</pallas_src>

<mosaic_0001>
module attributes {stable_mosaic.version = 11 : i64} {
  func.func @fused_encoder_kernel(%arg0: memref<16x8xf32, #tpu.memory_space<vmem>>, %arg1: memref<5x2x8x8xf32, #tpu.memory_space<vmem>>, %arg2: memref<5x2x8x1xf32, #tpu.memory_space<vmem>>, %arg3: memref<5x2x8x1xf32, #tpu.memory_space<vmem>>, %arg4: memref<2x8x1xf32, #tpu.memory_space<vmem>>, %arg5: memref<8x32xf32, #tpu.memory_space<vmem>>, %arg6: memref<1x32xf32, #tpu.memory_space<vmem>>, %arg7: memref<2x32x16xf32, #tpu.memory_space<vmem>>, %arg8: memref<2x32x16xf32, #tpu.memory_space<vmem>>, %arg9: memref<2x1x16xf32, #tpu.memory_space<vmem>>, %arg10: memref<2x1x16xf32, #tpu.memory_space<vmem>>, %arg11: memref<2x16x16xf32, #tpu.memory_space<vmem>>, %arg12: memref<2x1x16xf32, #tpu.memory_space<vmem>>, %arg13: memref<2x32x64xf32, #tpu.memory_space<vmem>>, %arg14: memref<2x16x64xf32, #tpu.memory_space<vmem>>, %arg15: memref<2x1x64xf32, #tpu.memory_space<vmem>>, %arg16: memref<2x64x32xf32, #tpu.memory_space<vmem>>, %arg17: memref<2x1x32xf32, #tpu.memory_space<vmem>>, %arg18: memref<32x32xf32, #tpu.memory_space<vmem>>, %arg19: memref<1x32xf32, #tpu.memory_space<vmem>>, %arg20: memref<32x32xf32, #tpu.memory_space<vmem>>, %arg21: memref<1x32xf32, #tpu.memory_space<vmem>>, %arg22: memref<32x32xf32, #tpu.memory_space<vmem>>, %arg23: memref<1x32xf32, #tpu.memory_space<vmem>>, %arg24: memref<32x16xf32, #tpu.memory_space<vmem>>, %arg25: memref<1x16xf32, #tpu.memory_space<vmem>>, %arg26: memref<2x16xf32, #tpu.memory_space<vmem>>) attributes {dimension_semantics = [], scalar_prefetch = 0 : i64, scratch_operands = 0 : i64, tpu.core_type = #tpu.core_type<tc>} {
    %c0 = arith.constant 0 : index
    %c0_0 = arith.constant 0 : index
    %c0_1 = arith.constant 0 : index
    %0 = vector.load %arg4[%c0, %c0_0, %c0_1] : memref<2x8x1xf32, #tpu.memory_space<vmem>>, vector<2x8x1xf32>
    %c0_2 = arith.constant 0 : index
    %c0_3 = arith.constant 0 : index
    %1 = vector.load %arg0[%c0_2, %c0_3] : memref<16x8xf32, #tpu.memory_space<vmem>>, vector<16x8xf32>
    %c0_4 = arith.constant 0 : index
    %c0_5 = arith.constant 0 : index
    %2 = vector.load %arg5[%c0_4, %c0_5] : memref<8x32xf32, #tpu.memory_space<vmem>>, vector<8x32xf32>
    %cst = arith.constant dense<0.000000e+00> : vector<16x32xf32>
    %3 = tpu.matmul %1, %2, %cst {dimension_numbers = #tpu.dot_dimension_numbers<[1], [0], [0], [1], [0, 0, 1, 1], [], []>} : vector<16x8xf32>, vector<8x32xf32>, vector<16x32xf32> -> vector<16x32xf32>
    %c0_6 = arith.constant 0 : index
    %c0_7 = arith.constant 0 : index
    %4 = vector.load %arg6[%c0_6, %c0_7] : memref<1x32xf32, #tpu.memory_space<vmem>>, vector<1x32xf32>
    %5 = vector.broadcast %4 : vector<1x32xf32> to vector<16x32xf32>
    %6 = arith.addf %3, %5 : vector<16x32xf32>
    %c0_8 = arith.constant 0 : index
    %c0_9 = arith.constant 0 : index
    %c0_10 = arith.constant 0 : index
    %7 = vector.load %arg7[%c0_8, %c0_9, %c0_10] : memref<2x32x16xf32, #tpu.memory_space<vmem>>, vector<1x32x16xf32>
    %8 = vector.shape_cast %7 : vector<1x32x16xf32> to vector<32x16xf32>
    %cst_11 = arith.constant dense<0.000000e+00> : vector<16x16xf32>
    %9 = tpu.matmul %6, %8, %cst_11 {dimension_numbers = #tpu.dot_dimension_numbers<[1], [0], [0], [1], [0, 0, 1, 1], [], []>} : vector<16x32xf32>, vector<32x16xf32>, vector<16x16xf32> -> vector<16x16xf32>
    %c0_12 = arith.constant 0 : index
    %c0_13 = arith.constant 0 : index
    %c0_14 = arith.constant 0 : index
    %10 = vector.load %arg10[%c0_12, %c0_13, %c0_14] : memref<2x1x16xf32, #tpu.memory_space<vmem>>, vector<1x1x16xf32>
    %11 = vector.shape_cast %10 : vector<1x1x16xf32> to vector<1x16xf32>
    %12 = vector.broadcast %11 : vector<1x16xf32> to vector<16x16xf32>
    %13 = arith.addf %9, %12 : vector<16x16xf32>
    %14 = vector.shape_cast %13 : vector<16x16xf32> to vector<2x8x16xf32>
    %c0_15 = arith.constant 0 : index
    %c0_16 = arith.constant 0 : index
    %c0_17 = arith.constant 0 : index
    %15 = vector.load %arg8[%c0_15, %c0_16, %c0_17] : memref<2x32x16xf32, #tpu.memory_space<vmem>>, vector<1x32x16xf32>
    %16 = vector.shape_cast %15 : vector<1x32x16xf32> to vector<32x16xf32>
    %cst_18 = arith.constant dense<0.000000e+00> : vector<16x16xf32>
    %17 = tpu.matmul %6, %16, %cst_18 {dimension_numbers = #tpu.dot_dimension_numbers<[1], [0], [0], [1], [0, 0, 1, 1], [], []>} : vector<16x32xf32>, vector<32x16xf32>, vector<16x16xf32> -> vector<16x16xf32>
    %18 = vector.shape_cast %17 : vector<16x16xf32> to vector<2x8x16xf32>
    %c0_19 = arith.constant 0 : index
    %c0_20 = arith.constant 0 : index
    %c0_21 = arith.constant 0 : index
    %19 = vector.load %arg9[%c0_19, %c0_20, %c0_21] : memref<2x1x16xf32, #tpu.memory_space<vmem>>, vector<1x1x16xf32>
    %20 = vector.shape_cast %19 : vector<1x1x16xf32> to vector<1x16xf32>
    %cst_22 = arith.constant 0.000000e+00 : f32
    %21 = vector.broadcast %cst_22 : f32 to vector<2x8x16xf32>
    %c0_23 = arith.constant 0 : index
    %c0_24 = arith.constant 0 : index
    %c0_25 = arith.constant 0 : index
    %c0_26 = arith.constant 0 : index
    %22 = vector.load %arg1[%c0_23, %c0_24, %c0_25, %c0_26] : memref<5x2x8x8xf32, #tpu.memory_space<vmem>>, vector<1x2x8x8xf32>
    %23 = vector.shape_cast %22 : vector<1x2x8x8xf32> to vector<2x8x8xf32>
    "tpu.trace_start"() <{level = 10 : i32, message = "bnm,bmh->bnh"}> : () -> ()
    %cst_27 = arith.constant dense<0.000000e+00> : vector<2x8x16xf32>
    %24 = tpu.matmul %23, %18, %cst_27 {dimension_numbers = #tpu.dot_dimension_numbers<[2], [1], [1], [2], [0, 0, 0, 1, 1, 2], [0], [0]>} : vector<2x8x8xf32>, vector<2x8x16xf32>, vector<2x8x16xf32> -> vector<2x8x16xf32>
    "tpu.trace_stop"() : () -> ()
    %25 = arith.addf %14, %24 : vector<2x8x16xf32>
    %c0_28 = arith.constant 0 : index
    %c0_29 = arith.constant 0 : index
    %c0_30 = arith.constant 0 : index
    %c0_31 = arith.constant 0 : index
    %26 = vector.load %arg2[%c0_28, %c0_29, %c0_30, %c0_31] : memref<5x2x8x1xf32, #tpu.memory_space<vmem>>, vector<1x2x8x1xf32>
    %27 = vector.shape_cast %26 : vector<1x2x8x1xf32> to vector<2x8x1xf32>
    %28 = vector.shape_cast %20 : vector<1x16xf32> to vector<1x1x16xf32>
    %29 = vector.broadcast %27 : vector<2x8x1xf32> to vector<2x8x16xf32>
    %30 = vector.broadcast %28 : vector<1x1x16xf32> to vector<2x8x16xf32>
    %31 = arith.mulf %29, %30 : vector<2x8x16xf32>
    %32 = arith.addf %25, %31 : vector<2x8x16xf32>
    %33 = arith.negf %32 : vector<2x8x16xf32>
    %34 = math.exp %33 : vector<2x8x16xf32>
    %cst_32 = arith.constant 1.000000e+00 : f32
    %35 = vector.broadcast %cst_32 : f32 to vector<2x8x16xf32>
    %36 = arith.addf %35, %34 : vector<2x8x16xf32>
    %37 = arith.divf %35, %36 : vector<2x8x16xf32>
    %38 = arith.mulf %32, %37 : vector<2x8x16xf32>
    %39 = vector.shape_cast %38 : vector<2x8x16xf32> to vector<16x16xf32>
    %c0_33 = arith.constant 0 : index
    %c0_34 = arith.constant 0 : index
    %c0_35 = arith.constant 0 : index
    %40 = vector.load %arg11[%c0_33, %c0_34, %c0_35] : memref<2x16x16xf32, #tpu.memory_space<vmem>>, vector<1x16x16xf32>
    %41 = vector.shape_cast %40 : vector<1x16x16xf32> to vector<16x16xf32>
    %cst_36 = arith.constant dense<0.000000e+00> : vector<16x16xf32>
    %42 = tpu.matmul %39, %41, %cst_36 {dimension_numbers = #tpu.dot_dimension_numbers<[1], [0], [0], [1], [0, 0, 1, 1], [], []>} : vector<16x16xf32>, vector<16x16xf32>, vector<16x16xf32> -> vector<16x16xf32>
    %c0_37 = arith.constant 0 : index
    %c0_38 = arith.constant 0 : index
    %c0_39 = arith.constant 0 : index
    %43 = vector.load %arg12[%c0_37, %c0_38, %c0_39] : memref<2x1x16xf32, #tpu.memory_space<vmem>>, vector<1x1x16xf32>
    %44 = vector.shape_cast %43 : vector<1x1x16xf32> to vector<1x16xf32>
    %45 = vector.broadcast %44 : vector<1x16xf32> to vector<16x16xf32>
    %46 = arith.addf %42, %45 : vector<16x16xf32>
    %47 = arith.negf %46 : vector<16x16xf32>
    %48 = math.exp %47 : vector<16x16xf32>
    %cst_40 = arith.constant 1.000000e+00 : f32
    %49 = vector.broadcast %cst_40 : f32 to vector<16x16xf32>
    %50 = arith.addf %49, %48 : vector<16x16xf32>
    %51 = arith.divf %49, %50 : vector<16x16xf32>
    %52 = arith.mulf %46, %51 : vector<16x16xf32>
    %53 = vector.shape_cast %52 : vector<16x16xf32> to vector<2x8x16xf32>
    %c0_41 = arith.constant 0 : index
    %c0_42 = arith.constant 0 : index
    %c0_43 = arith.constant 0 : index
    %c0_44 = arith.constant 0 : index
    %54 = vector.load %arg3[%c0_41, %c0_42, %c0_43, %c0_44] : memref<5x2x8x1xf32, #tpu.memory_space<vmem>>, vector<1x2x8x1xf32>
    %55 = vector.shape_cast %54 : vector<1x2x8x1xf32> to vector<2x8x1xf32>
    %56 = vector.broadcast %55 : vector<2x8x1xf32> to vector<2x8x16xf32>
    %57 = arith.mulf %53, %56 : vector<2x8x16xf32>
    %58 = arith.addf %21, %57 : vector<2x8x16xf32>
    %c1 = arith.constant 1 : index
    %c0_45 = arith.constant 0 : index
    %c0_46 = arith.constant 0 : index
    %c0_47 = arith.constant 0 : index
    %59 = vector.load %arg1[%c1, %c0_45, %c0_46, %c0_47] : memref<5x2x8x8xf32, #tpu.memory_space<vmem>>, vector<1x2x8x8xf32>
    %60 = vector.shape_cast %59 : vector<1x2x8x8xf32> to vector<2x8x8xf32>
    "tpu.trace_start"() <{level = 10 : i32, message = "bnm,bmh->bnh"}> : () -> ()
    %cst_48 = arith.constant dense<0.000000e+00> : vector<2x8x16xf32>
    %61 = tpu.matmul %60, %18, %cst_48 {dimension_numbers = #tpu.dot_dimension_numbers<[2], [1], [1], [2], [0, 0, 0, 1, 1, 2], [0], [0]>} : vector<2x8x8xf32>, vector<2x8x16xf32>, vector<2x8x16xf32> -> vector<2x8x16xf32>
    "tpu.trace_stop"() : () -> ()
    %62 = arith.addf %14, %61 : vector<2x8x16xf32>
    %c1_49 = arith.constant 1 : index
    %c0_50 = arith.constant 0 : index
    %c0_51 = arith.constant 0 : index
    %c0_52 = arith.constant 0 : index
    %63 = vector.load %arg2[%c1_49, %c0_50, %c0_51, %c0_52] : memref<5x2x8x1xf32, #tpu.memory_space<vmem>>, vector<1x2x8x1xf32>
    %64 = vector.shape_cast %63 : vector<1x2x8x1xf32> to vector<2x8x1xf32>
    %65 = vector.shape_cast %20 : vector<1x16xf32> to vector<1x1x16xf32>
    %66 = vector.broadcast %64 : vector<2x8x1xf32> to vector<2x8x16xf32>
    %67 = vector.broadcast %65 : vector<1x1x16xf32> to vector<2x8x16xf32>
    %68 = arith.mulf %66, %67 : vector<2x8x16xf32>
    %69 = arith.addf %62, %68 : vector<2x8x16xf32>
    %70 = arith.negf %69 : vector<2x8x16xf32>
    %71 = math.exp %70 : vector<2x8x16xf32>
    %cst_53 = arith.constant 1.000000e+00 : f32
    %72 = vector.broadcast %cst_53 : f32 to vector<2x8x16xf32>
    %73 = arith.addf %72, %71 : vector<2x8x16xf32>
    %74 = arith.divf %72, %73 : vector<2x8x16xf32>
    %75 = arith.mulf %69, %74 : vector<2x8x16xf32>
    %76 = vector.shape_cast %75 : vector<2x8x16xf32> to vector<16x16xf32>
    %c0_54 = arith.constant 0 : index
    %c0_55 = arith.constant 0 : index
    %c0_56 = arith.constant 0 : index
    %77 = vector.load %arg11[%c0_54, %c0_55, %c0_56] : memref<2x16x16xf32, #tpu.memory_space<vmem>>, vector<1x16x16xf32>
    %78 = vector.shape_cast %77 : vector<1x16x16xf32> to vector<16x16xf32>
    %cst_57 = arith.constant dense<0.000000e+00> : vector<16x16xf32>
    %79 = tpu.matmul %76, %78, %cst_57 {dimension_numbers = #tpu.dot_dimension_numbers<[1], [0], [0], [1], [0, 0, 1, 1], [], []>} : vector<16x16xf32>, vector<16x16xf32>, vector<16x16xf32> -> vector<16x16xf32>
    %c0_58 = arith.constant 0 : index
    %c0_59 = arith.constant 0 : index
    %c0_60 = arith.constant 0 : index
    %80 = vector.load %arg12[%c0_58, %c0_59, %c0_60] : memref<2x1x16xf32, #tpu.memory_space<vmem>>, vector<1x1x16xf32>
    %81 = vector.shape_cast %80 : vector<1x1x16xf32> to vector<1x16xf32>
    %82 = vector.broadcast %81 : vector<1x16xf32> to vector<16x16xf32>
    %83 = arith.addf %79, %82 : vector<16x16xf32>
    %84 = arith.negf %83 : vector<16x16xf32>
    %85 = math.exp %84 : vector<16x16xf32>
    %cst_61 = arith.constant 1.000000e+00 : f32
    %86 = vector.broadcast %cst_61 : f32 to vector<16x16xf32>
    %87 = arith.addf %86, %85 : vector<16x16xf32>
    %88 = arith.divf %86, %87 : vector<16x16xf32>
    %89 = arith.mulf %83, %88 : vector<16x16xf32>
    %90 = vector.shape_cast %89 : vector<16x16xf32> to vector<2x8x16xf32>
    %c1_62 = arith.constant 1 : index
    %c0_63 = arith.constant 0 : index
    %c0_64 = arith.constant 0 : index
    %c0_65 = arith.constant 0 : index
    %91 = vector.load %arg3[%c1_62, %c0_63, %c0_64, %c0_65] : memref<5x2x8x1xf32, #tpu.memory_space<vmem>>, vector<1x2x8x1xf32>
    %92 = vector.shape_cast %91 : vector<1x2x8x1xf32> to vector<2x8x1xf32>
    %93 = vector.broadcast %92 : vector<2x8x1xf32> to vector<2x8x16xf32>
    %94 = arith.mulf %90, %93 : vector<2x8x16xf32>
    %95 = arith.addf %58, %94 : vector<2x8x16xf32>
    %c2 = arith.constant 2 : index
    %c0_66 = arith.constant 0 : index
    %c0_67 = arith.constant 0 : index
    %c0_68 = arith.constant 0 : index
    %96 = vector.load %arg1[%c2, %c0_66, %c0_67, %c0_68] : memref<5x2x8x8xf32, #tpu.memory_space<vmem>>, vector<1x2x8x8xf32>
    %97 = vector.shape_cast %96 : vector<1x2x8x8xf32> to vector<2x8x8xf32>
    "tpu.trace_start"() <{level = 10 : i32, message = "bnm,bmh->bnh"}> : () -> ()
    %cst_69 = arith.constant dense<0.000000e+00> : vector<2x8x16xf32>
    %98 = tpu.matmul %97, %18, %cst_69 {dimension_numbers = #tpu.dot_dimension_numbers<[2], [1], [1], [2], [0, 0, 0, 1, 1, 2], [0], [0]>} : vector<2x8x8xf32>, vector<2x8x16xf32>, vector<2x8x16xf32> -> vector<2x8x16xf32>
    "tpu.trace_stop"() : () -> ()
    %99 = arith.addf %14, %98 : vector<2x8x16xf32>
    %c2_70 = arith.constant 2 : index
    %c0_71 = arith.constant 0 : index
    %c0_72 = arith.constant 0 : index
    %c0_73 = arith.constant 0 : index
    %100 = vector.load %arg2[%c2_70, %c0_71, %c0_72, %c0_73] : memref<5x2x8x1xf32, #tpu.memory_space<vmem>>, vector<1x2x8x1xf32>
    %101 = vector.shape_cast %100 : vector<1x2x8x1xf32> to vector<2x8x1xf32>
    %102 = vector.shape_cast %20 : vector<1x16xf32> to vector<1x1x16xf32>
    %103 = vector.broadcast %101 : vector<2x8x1xf32> to vector<2x8x16xf32>
    %104 = vector.broadcast %102 : vector<1x1x16xf32> to vector<2x8x16xf32>
    %105 = arith.mulf %103, %104 : vector<2x8x16xf32>
    %106 = arith.addf %99, %105 : vector<2x8x16xf32>
    %107 = arith.negf %106 : vector<2x8x16xf32>
    %108 = math.exp %107 : vector<2x8x16xf32>
    %cst_74 = arith.constant 1.000000e+00 : f32
    %109 = vector.broadcast %cst_74 : f32 to vector<2x8x16xf32>
    %110 = arith.addf %109, %108 : vector<2x8x16xf32>
    %111 = arith.divf %109, %110 : vector<2x8x16xf32>
    %112 = arith.mulf %106, %111 : vector<2x8x16xf32>
    %113 = vector.shape_cast %112 : vector<2x8x16xf32> to vector<16x16xf32>
    %c0_75 = arith.constant 0 : index
    %c0_76 = arith.constant 0 : index
    %c0_77 = arith.constant 0 : index
    %114 = vector.load %arg11[%c0_75, %c0_76, %c0_77] : memref<2x16x16xf32, #tpu.memory_space<vmem>>, vector<1x16x16xf32>
    %115 = vector.shape_cast %114 : vector<1x16x16xf32> to vector<16x16xf32>
    %cst_78 = arith.constant dense<0.000000e+00> : vector<16x16xf32>
    %116 = tpu.matmul %113, %115, %cst_78 {dimension_numbers = #tpu.dot_dimension_numbers<[1], [0], [0], [1], [0, 0, 1, 1], [], []>} : vector<16x16xf32>, vector<16x16xf32>, vector<16x16xf32> -> vector<16x16xf32>
    %c0_79 = arith.constant 0 : index
    %c0_80 = arith.constant 0 : index
    %c0_81 = arith.constant 0 : index
    %117 = vector.load %arg12[%c0_79, %c0_80, %c0_81] : memref<2x1x16xf32, #tpu.memory_space<vmem>>, vector<1x1x16xf32>
    %118 = vector.shape_cast %117 : vector<1x1x16xf32> to vector<1x16xf32>
    %119 = vector.broadcast %118 : vector<1x16xf32> to vector<16x16xf32>
    %120 = arith.addf %116, %119 : vector<16x16xf32>
    %121 = arith.negf %120 : vector<16x16xf32>
    %122 = math.exp %121 : vector<16x16xf32>
    %cst_82 = arith.constant 1.000000e+00 : f32
    %123 = vector.broadcast %cst_82 : f32 to vector<16x16xf32>
    %124 = arith.addf %123, %122 : vector<16x16xf32>
    %125 = arith.divf %123, %124 : vector<16x16xf32>
    %126 = arith.mulf %120, %125 : vector<16x16xf32>
    %127 = vector.shape_cast %126 : vector<16x16xf32> to vector<2x8x16xf32>
    %c2_83 = arith.constant 2 : index
    %c0_84 = arith.constant 0 : index
    %c0_85 = arith.constant 0 : index
    %c0_86 = arith.constant 0 : index
    %128 = vector.load %arg3[%c2_83, %c0_84, %c0_85, %c0_86] : memref<5x2x8x1xf32, #tpu.memory_space<vmem>>, vector<1x2x8x1xf32>
    %129 = vector.shape_cast %128 : vector<1x2x8x1xf32> to vector<2x8x1xf32>
    %130 = vector.broadcast %129 : vector<2x8x1xf32> to vector<2x8x16xf32>
    %131 = arith.mulf %127, %130 : vector<2x8x16xf32>
    %132 = arith.addf %95, %131 : vector<2x8x16xf32>
    %c3 = arith.constant 3 : index
    %c0_87 = arith.constant 0 : index
    %c0_88 = arith.constant 0 : index
    %c0_89 = arith.constant 0 : index
    %133 = vector.load %arg1[%c3, %c0_87, %c0_88, %c0_89] : memref<5x2x8x8xf32, #tpu.memory_space<vmem>>, vector<1x2x8x8xf32>
    %134 = vector.shape_cast %133 : vector<1x2x8x8xf32> to vector<2x8x8xf32>
    "tpu.trace_start"() <{level = 10 : i32, message = "bnm,bmh->bnh"}> : () -> ()
    %cst_90 = arith.constant dense<0.000000e+00> : vector<2x8x16xf32>
    %135 = tpu.matmul %134, %18, %cst_90 {dimension_numbers = #tpu.dot_dimension_numbers<[2], [1], [1], [2], [0, 0, 0, 1, 1, 2], [0], [0]>} : vector<2x8x8xf32>, vector<2x8x16xf32>, vector<2x8x16xf32> -> vector<2x8x16xf32>
    "tpu.trace_stop"() : () -> ()
    %136 = arith.addf %14, %135 : vector<2x8x16xf32>
    %c3_91 = arith.constant 3 : index
    %c0_92 = arith.constant 0 : index
    %c0_93 = arith.constant 0 : index
    %c0_94 = arith.constant 0 : index
    %137 = vector.load %arg2[%c3_91, %c0_92, %c0_93, %c0_94] : memref<5x2x8x1xf32, #tpu.memory_space<vmem>>, vector<1x2x8x1xf32>
    %138 = vector.shape_cast %137 : vector<1x2x8x1xf32> to vector<2x8x1xf32>
    %139 = vector.shape_cast %20 : vector<1x16xf32> to vector<1x1x16xf32>
    %140 = vector.broadcast %138 : vector<2x8x1xf32> to vector<2x8x16xf32>
    %141 = vector.broadcast %139 : vector<1x1x16xf32> to vector<2x8x16xf32>
    %142 = arith.mulf %140, %141 : vector<2x8x16xf32>
    %143 = arith.addf %136, %142 : vector<2x8x16xf32>
    %144 = arith.negf %143 : vector<2x8x16xf32>
    %145 = math.exp %144 : vector<2x8x16xf32>
    %cst_95 = arith.constant 1.000000e+00 : f32
    %146 = vector.broadcast %cst_95 : f32 to vector<2x8x16xf32>
    %147 = arith.addf %146, %145 : vector<2x8x16xf32>
    %148 = arith.divf %146, %147 : vector<2x8x16xf32>
    %149 = arith.mulf %143, %148 : vector<2x8x16xf32>
    %150 = vector.shape_cast %149 : vector<2x8x16xf32> to vector<16x16xf32>
    %c0_96 = arith.constant 0 : index
    %c0_97 = arith.constant 0 : index
    %c0_98 = arith.constant 0 : index
    %151 = vector.load %arg11[%c0_96, %c0_97, %c0_98] : memref<2x16x16xf32, #tpu.memory_space<vmem>>, vector<1x16x16xf32>
    %152 = vector.shape_cast %151 : vector<1x16x16xf32> to vector<16x16xf32>
    %cst_99 = arith.constant dense<0.000000e+00> : vector<16x16xf32>
    %153 = tpu.matmul %150, %152, %cst_99 {dimension_numbers = #tpu.dot_dimension_numbers<[1], [0], [0], [1], [0, 0, 1, 1], [], []>} : vector<16x16xf32>, vector<16x16xf32>, vector<16x16xf32> -> vector<16x16xf32>
    %c0_100 = arith.constant 0 : index
    %c0_101 = arith.constant 0 : index
    %c0_102 = arith.constant 0 : index
    %154 = vector.load %arg12[%c0_100, %c0_101, %c0_102] : memref<2x1x16xf32, #tpu.memory_space<vmem>>, vector<1x1x16xf32>
    %155 = vector.shape_cast %154 : vector<1x1x16xf32> to vector<1x16xf32>
    %156 = vector.broadcast %155 : vector<1x16xf32> to vector<16x16xf32>
    %157 = arith.addf %153, %156 : vector<16x16xf32>
    %158 = arith.negf %157 : vector<16x16xf32>
    %159 = math.exp %158 : vector<16x16xf32>
    %cst_103 = arith.constant 1.000000e+00 : f32
    %160 = vector.broadcast %cst_103 : f32 to vector<16x16xf32>
    %161 = arith.addf %160, %159 : vector<16x16xf32>
    %162 = arith.divf %160, %161 : vector<16x16xf32>
    %163 = arith.mulf %157, %162 : vector<16x16xf32>
    %164 = vector.shape_cast %163 : vector<16x16xf32> to vector<2x8x16xf32>
    %c3_104 = arith.constant 3 : index
    %c0_105 = arith.constant 0 : index
    %c0_106 = arith.constant 0 : index
    %c0_107 = arith.constant 0 : index
    %165 = vector.load %arg3[%c3_104, %c0_105, %c0_106, %c0_107] : memref<5x2x8x1xf32, #tpu.memory_space<vmem>>, vector<1x2x8x1xf32>
    %166 = vector.shape_cast %165 : vector<1x2x8x1xf32> to vector<2x8x1xf32>
    %167 = vector.broadcast %166 : vector<2x8x1xf32> to vector<2x8x16xf32>
    %168 = arith.mulf %164, %167 : vector<2x8x16xf32>
    %169 = arith.addf %132, %168 : vector<2x8x16xf32>
    %c4 = arith.constant 4 : index
    %c0_108 = arith.constant 0 : index
    %c0_109 = arith.constant 0 : index
    %c0_110 = arith.constant 0 : index
    %170 = vector.load %arg1[%c4, %c0_108, %c0_109, %c0_110] : memref<5x2x8x8xf32, #tpu.memory_space<vmem>>, vector<1x2x8x8xf32>
    %171 = vector.shape_cast %170 : vector<1x2x8x8xf32> to vector<2x8x8xf32>
    "tpu.trace_start"() <{level = 10 : i32, message = "bnm,bmh->bnh"}> : () -> ()
    %cst_111 = arith.constant dense<0.000000e+00> : vector<2x8x16xf32>
    %172 = tpu.matmul %171, %18, %cst_111 {dimension_numbers = #tpu.dot_dimension_numbers<[2], [1], [1], [2], [0, 0, 0, 1, 1, 2], [0], [0]>} : vector<2x8x8xf32>, vector<2x8x16xf32>, vector<2x8x16xf32> -> vector<2x8x16xf32>
    "tpu.trace_stop"() : () -> ()
    %173 = arith.addf %14, %172 : vector<2x8x16xf32>
    %c4_112 = arith.constant 4 : index
    %c0_113 = arith.constant 0 : index
    %c0_114 = arith.constant 0 : index
    %c0_115 = arith.constant 0 : index
    %174 = vector.load %arg2[%c4_112, %c0_113, %c0_114, %c0_115] : memref<5x2x8x1xf32, #tpu.memory_space<vmem>>, vector<1x2x8x1xf32>
    %175 = vector.shape_cast %174 : vector<1x2x8x1xf32> to vector<2x8x1xf32>
    %176 = vector.shape_cast %20 : vector<1x16xf32> to vector<1x1x16xf32>
    %177 = vector.broadcast %175 : vector<2x8x1xf32> to vector<2x8x16xf32>
    %178 = vector.broadcast %176 : vector<1x1x16xf32> to vector<2x8x16xf32>
    %179 = arith.mulf %177, %178 : vector<2x8x16xf32>
    %180 = arith.addf %173, %179 : vector<2x8x16xf32>
    %181 = arith.negf %180 : vector<2x8x16xf32>
    %182 = math.exp %181 : vector<2x8x16xf32>
    %cst_116 = arith.constant 1.000000e+00 : f32
    %183 = vector.broadcast %cst_116 : f32 to vector<2x8x16xf32>
    %184 = arith.addf %183, %182 : vector<2x8x16xf32>
    %185 = arith.divf %183, %184 : vector<2x8x16xf32>
    %186 = arith.mulf %180, %185 : vector<2x8x16xf32>
    %187 = vector.shape_cast %186 : vector<2x8x16xf32> to vector<16x16xf32>
    %c0_117 = arith.constant 0 : index
    %c0_118 = arith.constant 0 : index
    %c0_119 = arith.constant 0 : index
    %188 = vector.load %arg11[%c0_117, %c0_118, %c0_119] : memref<2x16x16xf32, #tpu.memory_space<vmem>>, vector<1x16x16xf32>
    %189 = vector.shape_cast %188 : vector<1x16x16xf32> to vector<16x16xf32>
    %cst_120 = arith.constant dense<0.000000e+00> : vector<16x16xf32>
    %190 = tpu.matmul %187, %189, %cst_120 {dimension_numbers = #tpu.dot_dimension_numbers<[1], [0], [0], [1], [0, 0, 1, 1], [], []>} : vector<16x16xf32>, vector<16x16xf32>, vector<16x16xf32> -> vector<16x16xf32>
    %c0_121 = arith.constant 0 : index
    %c0_122 = arith.constant 0 : index
    %c0_123 = arith.constant 0 : index
    %191 = vector.load %arg12[%c0_121, %c0_122, %c0_123] : memref<2x1x16xf32, #tpu.memory_space<vmem>>, vector<1x1x16xf32>
    %192 = vector.shape_cast %191 : vector<1x1x16xf32> to vector<1x16xf32>
    %193 = vector.broadcast %192 : vector<1x16xf32> to vector<16x16xf32>
    %194 = arith.addf %190, %193 : vector<16x16xf32>
    %195 = arith.negf %194 : vector<16x16xf32>
    %196 = math.exp %195 : vector<16x16xf32>
    %cst_124 = arith.constant 1.000000e+00 : f32
    %197 = vector.broadcast %cst_124 : f32 to vector<16x16xf32>
    %198 = arith.addf %197, %196 : vector<16x16xf32>
    %199 = arith.divf %197, %198 : vector<16x16xf32>
    %200 = arith.mulf %194, %199 : vector<16x16xf32>
    %201 = vector.shape_cast %200 : vector<16x16xf32> to vector<2x8x16xf32>
    %c4_125 = arith.constant 4 : index
    %c0_126 = arith.constant 0 : index
    %c0_127 = arith.constant 0 : index
    %c0_128 = arith.constant 0 : index
    %202 = vector.load %arg3[%c4_125, %c0_126, %c0_127, %c0_128] : memref<5x2x8x1xf32, #tpu.memory_space<vmem>>, vector<1x2x8x1xf32>
    %203 = vector.shape_cast %202 : vector<1x2x8x1xf32> to vector<2x8x1xf32>
    %204 = vector.broadcast %203 : vector<2x8x1xf32> to vector<2x8x16xf32>
    %205 = arith.mulf %201, %204 : vector<2x8x16xf32>
    %206 = arith.addf %169, %205 : vector<2x8x16xf32>
    %c0_129 = arith.constant 0 : index
    %c0_130 = arith.constant 0 : index
    %c0_131 = arith.constant 0 : index
    %207 = vector.load %arg13[%c0_129, %c0_130, %c0_131] : memref<2x32x64xf32, #tpu.memory_space<vmem>>, vector<1x32x64xf32>
    %208 = vector.shape_cast %207 : vector<1x32x64xf32> to vector<32x64xf32>
    %cst_132 = arith.constant dense<0.000000e+00> : vector<16x64xf32>
    %209 = tpu.matmul %6, %208, %cst_132 {dimension_numbers = #tpu.dot_dimension_numbers<[1], [0], [0], [1], [0, 0, 1, 1], [], []>} : vector<16x32xf32>, vector<32x64xf32>, vector<16x64xf32> -> vector<16x64xf32>
    %210 = vector.shape_cast %206 : vector<2x8x16xf32> to vector<16x16xf32>
    %c0_133 = arith.constant 0 : index
    %c0_134 = arith.constant 0 : index
    %c0_135 = arith.constant 0 : index
    %211 = vector.load %arg14[%c0_133, %c0_134, %c0_135] : memref<2x16x64xf32, #tpu.memory_space<vmem>>, vector<1x16x64xf32>
    %212 = vector.shape_cast %211 : vector<1x16x64xf32> to vector<16x64xf32>
    %cst_136 = arith.constant dense<0.000000e+00> : vector<16x64xf32>
    %213 = tpu.matmul %210, %212, %cst_136 {dimension_numbers = #tpu.dot_dimension_numbers<[1], [0], [0], [1], [0, 0, 1, 1], [], []>} : vector<16x16xf32>, vector<16x64xf32>, vector<16x64xf32> -> vector<16x64xf32>
    %214 = arith.addf %209, %213 : vector<16x64xf32>
    %c0_137 = arith.constant 0 : index
    %c0_138 = arith.constant 0 : index
    %c0_139 = arith.constant 0 : index
    %215 = vector.load %arg15[%c0_137, %c0_138, %c0_139] : memref<2x1x64xf32, #tpu.memory_space<vmem>>, vector<1x1x64xf32>
    %216 = vector.shape_cast %215 : vector<1x1x64xf32> to vector<1x64xf32>
    %217 = vector.broadcast %216 : vector<1x64xf32> to vector<16x64xf32>
    %218 = arith.addf %214, %217 : vector<16x64xf32>
    %219 = arith.negf %218 : vector<16x64xf32>
    %220 = math.exp %219 : vector<16x64xf32>
    %cst_140 = arith.constant 1.000000e+00 : f32
    %221 = vector.broadcast %cst_140 : f32 to vector<16x64xf32>
    %222 = arith.addf %221, %220 : vector<16x64xf32>
    %223 = arith.divf %221, %222 : vector<16x64xf32>
    %224 = arith.mulf %218, %223 : vector<16x64xf32>
    %c0_141 = arith.constant 0 : index
    %c0_142 = arith.constant 0 : index
    %c0_143 = arith.constant 0 : index
    %225 = vector.load %arg16[%c0_141, %c0_142, %c0_143] : memref<2x64x32xf32, #tpu.memory_space<vmem>>, vector<1x64x32xf32>
    %226 = vector.shape_cast %225 : vector<1x64x32xf32> to vector<64x32xf32>
    %cst_144 = arith.constant dense<0.000000e+00> : vector<16x32xf32>
    %227 = tpu.matmul %224, %226, %cst_144 {dimension_numbers = #tpu.dot_dimension_numbers<[1], [0], [0], [1], [0, 0, 1, 1], [], []>} : vector<16x64xf32>, vector<64x32xf32>, vector<16x32xf32> -> vector<16x32xf32>
    %c0_145 = arith.constant 0 : index
    %c0_146 = arith.constant 0 : index
    %c0_147 = arith.constant 0 : index
    %228 = vector.load %arg17[%c0_145, %c0_146, %c0_147] : memref<2x1x32xf32, #tpu.memory_space<vmem>>, vector<1x1x32xf32>
    %229 = vector.shape_cast %228 : vector<1x1x32xf32> to vector<1x32xf32>
    %230 = vector.broadcast %229 : vector<1x32xf32> to vector<16x32xf32>
    %231 = arith.addf %227, %230 : vector<16x32xf32>
    %232 = arith.addf %231, %6 : vector<16x32xf32>
    %c1_148 = arith.constant 1 : index
    %c0_149 = arith.constant 0 : index
    %c0_150 = arith.constant 0 : index
    %233 = vector.load %arg7[%c1_148, %c0_149, %c0_150] : memref<2x32x16xf32, #tpu.memory_space<vmem>>, vector<1x32x16xf32>
    %234 = vector.shape_cast %233 : vector<1x32x16xf32> to vector<32x16xf32>
    %cst_151 = arith.constant dense<0.000000e+00> : vector<16x16xf32>
    %235 = tpu.matmul %232, %234, %cst_151 {dimension_numbers = #tpu.dot_dimension_numbers<[1], [0], [0], [1], [0, 0, 1, 1], [], []>} : vector<16x32xf32>, vector<32x16xf32>, vector<16x16xf32> -> vector<16x16xf32>
    %c1_152 = arith.constant 1 : index
    %c0_153 = arith.constant 0 : index
    %c0_154 = arith.constant 0 : index
    %236 = vector.load %arg10[%c1_152, %c0_153, %c0_154] : memref<2x1x16xf32, #tpu.memory_space<vmem>>, vector<1x1x16xf32>
    %237 = vector.shape_cast %236 : vector<1x1x16xf32> to vector<1x16xf32>
    %238 = vector.broadcast %237 : vector<1x16xf32> to vector<16x16xf32>
    %239 = arith.addf %235, %238 : vector<16x16xf32>
    %240 = vector.shape_cast %239 : vector<16x16xf32> to vector<2x8x16xf32>
    %c1_155 = arith.constant 1 : index
    %c0_156 = arith.constant 0 : index
    %c0_157 = arith.constant 0 : index
    %241 = vector.load %arg8[%c1_155, %c0_156, %c0_157] : memref<2x32x16xf32, #tpu.memory_space<vmem>>, vector<1x32x16xf32>
    %242 = vector.shape_cast %241 : vector<1x32x16xf32> to vector<32x16xf32>
    %cst_158 = arith.constant dense<0.000000e+00> : vector<16x16xf32>
    %243 = tpu.matmul %232, %242, %cst_158 {dimension_numbers = #tpu.dot_dimension_numbers<[1], [0], [0], [1], [0, 0, 1, 1], [], []>} : vector<16x32xf32>, vector<32x16xf32>, vector<16x16xf32> -> vector<16x16xf32>
    %244 = vector.shape_cast %243 : vector<16x16xf32> to vector<2x8x16xf32>
    %c1_159 = arith.constant 1 : index
    %c0_160 = arith.constant 0 : index
    %c0_161 = arith.constant 0 : index
    %245 = vector.load %arg9[%c1_159, %c0_160, %c0_161] : memref<2x1x16xf32, #tpu.memory_space<vmem>>, vector<1x1x16xf32>
    %246 = vector.shape_cast %245 : vector<1x1x16xf32> to vector<1x16xf32>
    %cst_162 = arith.constant 0.000000e+00 : f32
    %247 = vector.broadcast %cst_162 : f32 to vector<2x8x16xf32>
    %c0_163 = arith.constant 0 : index
    %c0_164 = arith.constant 0 : index
    %c0_165 = arith.constant 0 : index
    %c0_166 = arith.constant 0 : index
    %248 = vector.load %arg1[%c0_163, %c0_164, %c0_165, %c0_166] : memref<5x2x8x8xf32, #tpu.memory_space<vmem>>, vector<1x2x8x8xf32>
    %249 = vector.shape_cast %248 : vector<1x2x8x8xf32> to vector<2x8x8xf32>
    "tpu.trace_start"() <{level = 10 : i32, message = "bnm,bmh->bnh"}> : () -> ()
    %cst_167 = arith.constant dense<0.000000e+00> : vector<2x8x16xf32>
    %250 = tpu.matmul %249, %244, %cst_167 {dimension_numbers = #tpu.dot_dimension_numbers<[2], [1], [1], [2], [0, 0, 0, 1, 1, 2], [0], [0]>} : vector<2x8x8xf32>, vector<2x8x16xf32>, vector<2x8x16xf32> -> vector<2x8x16xf32>
    "tpu.trace_stop"() : () -> ()
    %251 = arith.addf %240, %250 : vector<2x8x16xf32>
    %c0_168 = arith.constant 0 : index
    %c0_169 = arith.constant 0 : index
    %c0_170 = arith.constant 0 : index
    %c0_171 = arith.constant 0 : index
    %252 = vector.load %arg2[%c0_168, %c0_169, %c0_170, %c0_171] : memref<5x2x8x1xf32, #tpu.memory_space<vmem>>, vector<1x2x8x1xf32>
    %253 = vector.shape_cast %252 : vector<1x2x8x1xf32> to vector<2x8x1xf32>
    %254 = vector.shape_cast %246 : vector<1x16xf32> to vector<1x1x16xf32>
    %255 = vector.broadcast %253 : vector<2x8x1xf32> to vector<2x8x16xf32>
    %256 = vector.broadcast %254 : vector<1x1x16xf32> to vector<2x8x16xf32>
    %257 = arith.mulf %255, %256 : vector<2x8x16xf32>
    %258 = arith.addf %251, %257 : vector<2x8x16xf32>
    %259 = arith.negf %258 : vector<2x8x16xf32>
    %260 = math.exp %259 : vector<2x8x16xf32>
    %cst_172 = arith.constant 1.000000e+00 : f32
    %261 = vector.broadcast %cst_172 : f32 to vector<2x8x16xf32>
    %262 = arith.addf %261, %260 : vector<2x8x16xf32>
    %263 = arith.divf %261, %262 : vector<2x8x16xf32>
    %264 = arith.mulf %258, %263 : vector<2x8x16xf32>
    %265 = vector.shape_cast %264 : vector<2x8x16xf32> to vector<16x16xf32>
    %c1_173 = arith.constant 1 : index
    %c0_174 = arith.constant 0 : index
    %c0_175 = arith.constant 0 : index
    %266 = vector.load %arg11[%c1_173, %c0_174, %c0_175] : memref<2x16x16xf32, #tpu.memory_space<vmem>>, vector<1x16x16xf32>
    %267 = vector.shape_cast %266 : vector<1x16x16xf32> to vector<16x16xf32>
    %cst_176 = arith.constant dense<0.000000e+00> : vector<16x16xf32>
    %268 = tpu.matmul %265, %267, %cst_176 {dimension_numbers = #tpu.dot_dimension_numbers<[1], [0], [0], [1], [0, 0, 1, 1], [], []>} : vector<16x16xf32>, vector<16x16xf32>, vector<16x16xf32> -> vector<16x16xf32>
    %c1_177 = arith.constant 1 : index
    %c0_178 = arith.constant 0 : index
    %c0_179 = arith.constant 0 : index
    %269 = vector.load %arg12[%c1_177, %c0_178, %c0_179] : memref<2x1x16xf32, #tpu.memory_space<vmem>>, vector<1x1x16xf32>
    %270 = vector.shape_cast %269 : vector<1x1x16xf32> to vector<1x16xf32>
    %271 = vector.broadcast %270 : vector<1x16xf32> to vector<16x16xf32>
    %272 = arith.addf %268, %271 : vector<16x16xf32>
    %273 = arith.negf %272 : vector<16x16xf32>
    %274 = math.exp %273 : vector<16x16xf32>
    %cst_180 = arith.constant 1.000000e+00 : f32
    %275 = vector.broadcast %cst_180 : f32 to vector<16x16xf32>
    %276 = arith.addf %275, %274 : vector<16x16xf32>
    %277 = arith.divf %275, %276 : vector<16x16xf32>
    %278 = arith.mulf %272, %277 : vector<16x16xf32>
    %279 = vector.shape_cast %278 : vector<16x16xf32> to vector<2x8x16xf32>
    %c0_181 = arith.constant 0 : index
    %c0_182 = arith.constant 0 : index
    %c0_183 = arith.constant 0 : index
    %c0_184 = arith.constant 0 : index
    %280 = vector.load %arg3[%c0_181, %c0_182, %c0_183, %c0_184] : memref<5x2x8x1xf32, #tpu.memory_space<vmem>>, vector<1x2x8x1xf32>
    %281 = vector.shape_cast %280 : vector<1x2x8x1xf32> to vector<2x8x1xf32>
    %282 = vector.broadcast %281 : vector<2x8x1xf32> to vector<2x8x16xf32>
    %283 = arith.mulf %279, %282 : vector<2x8x16xf32>
    %284 = arith.addf %247, %283 : vector<2x8x16xf32>
    %c1_185 = arith.constant 1 : index
    %c0_186 = arith.constant 0 : index
    %c0_187 = arith.constant 0 : index
    %c0_188 = arith.constant 0 : index
    %285 = vector.load %arg1[%c1_185, %c0_186, %c0_187, %c0_188] : memref<5x2x8x8xf32, #tpu.memory_space<vmem>>, vector<1x2x8x8xf32>
    %286 = vector.shape_cast %285 : vector<1x2x8x8xf32> to vector<2x8x8xf32>
    "tpu.trace_start"() <{level = 10 : i32, message = "bnm,bmh->bnh"}> : () -> ()
    %cst_189 = arith.constant dense<0.000000e+00> : vector<2x8x16xf32>
    %287 = tpu.matmul %286, %244, %cst_189 {dimension_numbers = #tpu.dot_dimension_numbers<[2], [1], [1], [2], [0, 0, 0, 1, 1, 2], [0], [0]>} : vector<2x8x8xf32>, vector<2x8x16xf32>, vector<2x8x16xf32> -> vector<2x8x16xf32>
    "tpu.trace_stop"() : () -> ()
    %288 = arith.addf %240, %287 : vector<2x8x16xf32>
    %c1_190 = arith.constant 1 : index
    %c0_191 = arith.constant 0 : index
    %c0_192 = arith.constant 0 : index
    %c0_193 = arith.constant 0 : index
    %289 = vector.load %arg2[%c1_190, %c0_191, %c0_192, %c0_193] : memref<5x2x8x1xf32, #tpu.memory_space<vmem>>, vector<1x2x8x1xf32>
    %290 = vector.shape_cast %289 : vector<1x2x8x1xf32> to vector<2x8x1xf32>
    %291 = vector.shape_cast %246 : vector<1x16xf32> to vector<1x1x16xf32>
    %292 = vector.broadcast %290 : vector<2x8x1xf32> to vector<2x8x16xf32>
    %293 = vector.broadcast %291 : vector<1x1x16xf32> to vector<2x8x16xf32>
    %294 = arith.mulf %292, %293 : vector<2x8x16xf32>
    %295 = arith.addf %288, %294 : vector<2x8x16xf32>
    %296 = arith.negf %295 : vector<2x8x16xf32>
    %297 = math.exp %296 : vector<2x8x16xf32>
    %cst_194 = arith.constant 1.000000e+00 : f32
    %298 = vector.broadcast %cst_194 : f32 to vector<2x8x16xf32>
    %299 = arith.addf %298, %297 : vector<2x8x16xf32>
    %300 = arith.divf %298, %299 : vector<2x8x16xf32>
    %301 = arith.mulf %295, %300 : vector<2x8x16xf32>
    %302 = vector.shape_cast %301 : vector<2x8x16xf32> to vector<16x16xf32>
    %c1_195 = arith.constant 1 : index
    %c0_196 = arith.constant 0 : index
    %c0_197 = arith.constant 0 : index
    %303 = vector.load %arg11[%c1_195, %c0_196, %c0_197] : memref<2x16x16xf32, #tpu.memory_space<vmem>>, vector<1x16x16xf32>
    %304 = vector.shape_cast %303 : vector<1x16x16xf32> to vector<16x16xf32>
    %cst_198 = arith.constant dense<0.000000e+00> : vector<16x16xf32>
    %305 = tpu.matmul %302, %304, %cst_198 {dimension_numbers = #tpu.dot_dimension_numbers<[1], [0], [0], [1], [0, 0, 1, 1], [], []>} : vector<16x16xf32>, vector<16x16xf32>, vector<16x16xf32> -> vector<16x16xf32>
    %c1_199 = arith.constant 1 : index
    %c0_200 = arith.constant 0 : index
    %c0_201 = arith.constant 0 : index
    %306 = vector.load %arg12[%c1_199, %c0_200, %c0_201] : memref<2x1x16xf32, #tpu.memory_space<vmem>>, vector<1x1x16xf32>
    %307 = vector.shape_cast %306 : vector<1x1x16xf32> to vector<1x16xf32>
    %308 = vector.broadcast %307 : vector<1x16xf32> to vector<16x16xf32>
    %309 = arith.addf %305, %308 : vector<16x16xf32>
    %310 = arith.negf %309 : vector<16x16xf32>
    %311 = math.exp %310 : vector<16x16xf32>
    %cst_202 = arith.constant 1.000000e+00 : f32
    %312 = vector.broadcast %cst_202 : f32 to vector<16x16xf32>
    %313 = arith.addf %312, %311 : vector<16x16xf32>
    %314 = arith.divf %312, %313 : vector<16x16xf32>
    %315 = arith.mulf %309, %314 : vector<16x16xf32>
    %316 = vector.shape_cast %315 : vector<16x16xf32> to vector<2x8x16xf32>
    %c1_203 = arith.constant 1 : index
    %c0_204 = arith.constant 0 : index
    %c0_205 = arith.constant 0 : index
    %c0_206 = arith.constant 0 : index
    %317 = vector.load %arg3[%c1_203, %c0_204, %c0_205, %c0_206] : memref<5x2x8x1xf32, #tpu.memory_space<vmem>>, vector<1x2x8x1xf32>
    %318 = vector.shape_cast %317 : vector<1x2x8x1xf32> to vector<2x8x1xf32>
    %319 = vector.broadcast %318 : vector<2x8x1xf32> to vector<2x8x16xf32>
    %320 = arith.mulf %316, %319 : vector<2x8x16xf32>
    %321 = arith.addf %284, %320 : vector<2x8x16xf32>
    %c2_207 = arith.constant 2 : index
    %c0_208 = arith.constant 0 : index
    %c0_209 = arith.constant 0 : index
    %c0_210 = arith.constant 0 : index
    %322 = vector.load %arg1[%c2_207, %c0_208, %c0_209, %c0_210] : memref<5x2x8x8xf32, #tpu.memory_space<vmem>>, vector<1x2x8x8xf32>
    %323 = vector.shape_cast %322 : vector<1x2x8x8xf32> to vector<2x8x8xf32>
    "tpu.trace_start"() <{level = 10 : i32, message = "bnm,bmh->bnh"}> : () -> ()
    %cst_211 = arith.constant dense<0.000000e+00> : vector<2x8x16xf32>
    %324 = tpu.matmul %323, %244, %cst_211 {dimension_numbers = #tpu.dot_dimension_numbers<[2], [1], [1], [2], [0, 0, 0, 1, 1, 2], [0], [0]>} : vector<2x8x8xf32>, vector<2x8x16xf32>, vector<2x8x16xf32> -> vector<2x8x16xf32>
    "tpu.trace_stop"() : () -> ()
    %325 = arith.addf %240, %324 : vector<2x8x16xf32>
    %c2_212 = arith.constant 2 : index
    %c0_213 = arith.constant 0 : index
    %c0_214 = arith.constant 0 : index
    %c0_215 = arith.constant 0 : index
    %326 = vector.load %arg2[%c2_212, %c0_213, %c0_214, %c0_215] : memref<5x2x8x1xf32, #tpu.memory_space<vmem>>, vector<1x2x8x1xf32>
    %327 = vector.shape_cast %326 : vector<1x2x8x1xf32> to vector<2x8x1xf32>
    %328 = vector.shape_cast %246 : vector<1x16xf32> to vector<1x1x16xf32>
    %329 = vector.broadcast %327 : vector<2x8x1xf32> to vector<2x8x16xf32>
    %330 = vector.broadcast %328 : vector<1x1x16xf32> to vector<2x8x16xf32>
    %331 = arith.mulf %329, %330 : vector<2x8x16xf32>
    %332 = arith.addf %325, %331 : vector<2x8x16xf32>
    %333 = arith.negf %332 : vector<2x8x16xf32>
    %334 = math.exp %333 : vector<2x8x16xf32>
    %cst_216 = arith.constant 1.000000e+00 : f32
    %335 = vector.broadcast %cst_216 : f32 to vector<2x8x16xf32>
    %336 = arith.addf %335, %334 : vector<2x8x16xf32>
    %337 = arith.divf %335, %336 : vector<2x8x16xf32>
    %338 = arith.mulf %332, %337 : vector<2x8x16xf32>
    %339 = vector.shape_cast %338 : vector<2x8x16xf32> to vector<16x16xf32>
    %c1_217 = arith.constant 1 : index
    %c0_218 = arith.constant 0 : index
    %c0_219 = arith.constant 0 : index
    %340 = vector.load %arg11[%c1_217, %c0_218, %c0_219] : memref<2x16x16xf32, #tpu.memory_space<vmem>>, vector<1x16x16xf32>
    %341 = vector.shape_cast %340 : vector<1x16x16xf32> to vector<16x16xf32>
    %cst_220 = arith.constant dense<0.000000e+00> : vector<16x16xf32>
    %342 = tpu.matmul %339, %341, %cst_220 {dimension_numbers = #tpu.dot_dimension_numbers<[1], [0], [0], [1], [0, 0, 1, 1], [], []>} : vector<16x16xf32>, vector<16x16xf32>, vector<16x16xf32> -> vector<16x16xf32>
    %c1_221 = arith.constant 1 : index
    %c0_222 = arith.constant 0 : index
    %c0_223 = arith.constant 0 : index
    %343 = vector.load %arg12[%c1_221, %c0_222, %c0_223] : memref<2x1x16xf32, #tpu.memory_space<vmem>>, vector<1x1x16xf32>
    %344 = vector.shape_cast %343 : vector<1x1x16xf32> to vector<1x16xf32>
    %345 = vector.broadcast %344 : vector<1x16xf32> to vector<16x16xf32>
    %346 = arith.addf %342, %345 : vector<16x16xf32>
    %347 = arith.negf %346 : vector<16x16xf32>
    %348 = math.exp %347 : vector<16x16xf32>
    %cst_224 = arith.constant 1.000000e+00 : f32
    %349 = vector.broadcast %cst_224 : f32 to vector<16x16xf32>
    %350 = arith.addf %349, %348 : vector<16x16xf32>
    %351 = arith.divf %349, %350 : vector<16x16xf32>
    %352 = arith.mulf %346, %351 : vector<16x16xf32>
    %353 = vector.shape_cast %352 : vector<16x16xf32> to vector<2x8x16xf32>
    %c2_225 = arith.constant 2 : index
    %c0_226 = arith.constant 0 : index
    %c0_227 = arith.constant 0 : index
    %c0_228 = arith.constant 0 : index
    %354 = vector.load %arg3[%c2_225, %c0_226, %c0_227, %c0_228] : memref<5x2x8x1xf32, #tpu.memory_space<vmem>>, vector<1x2x8x1xf32>
    %355 = vector.shape_cast %354 : vector<1x2x8x1xf32> to vector<2x8x1xf32>
    %356 = vector.broadcast %355 : vector<2x8x1xf32> to vector<2x8x16xf32>
    %357 = arith.mulf %353, %356 : vector<2x8x16xf32>
    %358 = arith.addf %321, %357 : vector<2x8x16xf32>
    %c3_229 = arith.constant 3 : index
    %c0_230 = arith.constant 0 : index
    %c0_231 = arith.constant 0 : index
    %c0_232 = arith.constant 0 : index
    %359 = vector.load %arg1[%c3_229, %c0_230, %c0_231, %c0_232] : memref<5x2x8x8xf32, #tpu.memory_space<vmem>>, vector<1x2x8x8xf32>
    %360 = vector.shape_cast %359 : vector<1x2x8x8xf32> to vector<2x8x8xf32>
    "tpu.trace_start"() <{level = 10 : i32, message = "bnm,bmh->bnh"}> : () -> ()
    %cst_233 = arith.constant dense<0.000000e+00> : vector<2x8x16xf32>
    %361 = tpu.matmul %360, %244, %cst_233 {dimension_numbers = #tpu.dot_dimension_numbers<[2], [1], [1], [2], [0, 0, 0, 1, 1, 2], [0], [0]>} : vector<2x8x8xf32>, vector<2x8x16xf32>, vector<2x8x16xf32> -> vector<2x8x16xf32>
    "tpu.trace_stop"() : () -> ()
    %362 = arith.addf %240, %361 : vector<2x8x16xf32>
    %c3_234 = arith.constant 3 : index
    %c0_235 = arith.constant 0 : index
    %c0_236 = arith.constant 0 : index
    %c0_237 = arith.constant 0 : index
    %363 = vector.load %arg2[%c3_234, %c0_235, %c0_236, %c0_237] : memref<5x2x8x1xf32, #tpu.memory_space<vmem>>, vector<1x2x8x1xf32>
    %364 = vector.shape_cast %363 : vector<1x2x8x1xf32> to vector<2x8x1xf32>
    %365 = vector.shape_cast %246 : vector<1x16xf32> to vector<1x1x16xf32>
    %366 = vector.broadcast %364 : vector<2x8x1xf32> to vector<2x8x16xf32>
    %367 = vector.broadcast %365 : vector<1x1x16xf32> to vector<2x8x16xf32>
    %368 = arith.mulf %366, %367 : vector<2x8x16xf32>
    %369 = arith.addf %362, %368 : vector<2x8x16xf32>
    %370 = arith.negf %369 : vector<2x8x16xf32>
    %371 = math.exp %370 : vector<2x8x16xf32>
    %cst_238 = arith.constant 1.000000e+00 : f32
    %372 = vector.broadcast %cst_238 : f32 to vector<2x8x16xf32>
    %373 = arith.addf %372, %371 : vector<2x8x16xf32>
    %374 = arith.divf %372, %373 : vector<2x8x16xf32>
    %375 = arith.mulf %369, %374 : vector<2x8x16xf32>
    %376 = vector.shape_cast %375 : vector<2x8x16xf32> to vector<16x16xf32>
    %c1_239 = arith.constant 1 : index
    %c0_240 = arith.constant 0 : index
    %c0_241 = arith.constant 0 : index
    %377 = vector.load %arg11[%c1_239, %c0_240, %c0_241] : memref<2x16x16xf32, #tpu.memory_space<vmem>>, vector<1x16x16xf32>
    %378 = vector.shape_cast %377 : vector<1x16x16xf32> to vector<16x16xf32>
    %cst_242 = arith.constant dense<0.000000e+00> : vector<16x16xf32>
    %379 = tpu.matmul %376, %378, %cst_242 {dimension_numbers = #tpu.dot_dimension_numbers<[1], [0], [0], [1], [0, 0, 1, 1], [], []>} : vector<16x16xf32>, vector<16x16xf32>, vector<16x16xf32> -> vector<16x16xf32>
    %c1_243 = arith.constant 1 : index
    %c0_244 = arith.constant 0 : index
    %c0_245 = arith.constant 0 : index
    %380 = vector.load %arg12[%c1_243, %c0_244, %c0_245] : memref<2x1x16xf32, #tpu.memory_space<vmem>>, vector<1x1x16xf32>
    %381 = vector.shape_cast %380 : vector<1x1x16xf32> to vector<1x16xf32>
    %382 = vector.broadcast %381 : vector<1x16xf32> to vector<16x16xf32>
    %383 = arith.addf %379, %382 : vector<16x16xf32>
    %384 = arith.negf %383 : vector<16x16xf32>
    %385 = math.exp %384 : vector<16x16xf32>
    %cst_246 = arith.constant 1.000000e+00 : f32
    %386 = vector.broadcast %cst_246 : f32 to vector<16x16xf32>
    %387 = arith.addf %386, %385 : vector<16x16xf32>
    %388 = arith.divf %386, %387 : vector<16x16xf32>
    %389 = arith.mulf %383, %388 : vector<16x16xf32>
    %390 = vector.shape_cast %389 : vector<16x16xf32> to vector<2x8x16xf32>
    %c3_247 = arith.constant 3 : index
    %c0_248 = arith.constant 0 : index
    %c0_249 = arith.constant 0 : index
    %c0_250 = arith.constant 0 : index
    %391 = vector.load %arg3[%c3_247, %c0_248, %c0_249, %c0_250] : memref<5x2x8x1xf32, #tpu.memory_space<vmem>>, vector<1x2x8x1xf32>
    %392 = vector.shape_cast %391 : vector<1x2x8x1xf32> to vector<2x8x1xf32>
    %393 = vector.broadcast %392 : vector<2x8x1xf32> to vector<2x8x16xf32>
    %394 = arith.mulf %390, %393 : vector<2x8x16xf32>
    %395 = arith.addf %358, %394 : vector<2x8x16xf32>
    %c4_251 = arith.constant 4 : index
    %c0_252 = arith.constant 0 : index
    %c0_253 = arith.constant 0 : index
    %c0_254 = arith.constant 0 : index
    %396 = vector.load %arg1[%c4_251, %c0_252, %c0_253, %c0_254] : memref<5x2x8x8xf32, #tpu.memory_space<vmem>>, vector<1x2x8x8xf32>
    %397 = vector.shape_cast %396 : vector<1x2x8x8xf32> to vector<2x8x8xf32>
    "tpu.trace_start"() <{level = 10 : i32, message = "bnm,bmh->bnh"}> : () -> ()
    %cst_255 = arith.constant dense<0.000000e+00> : vector<2x8x16xf32>
    %398 = tpu.matmul %397, %244, %cst_255 {dimension_numbers = #tpu.dot_dimension_numbers<[2], [1], [1], [2], [0, 0, 0, 1, 1, 2], [0], [0]>} : vector<2x8x8xf32>, vector<2x8x16xf32>, vector<2x8x16xf32> -> vector<2x8x16xf32>
    "tpu.trace_stop"() : () -> ()
    %399 = arith.addf %240, %398 : vector<2x8x16xf32>
    %c4_256 = arith.constant 4 : index
    %c0_257 = arith.constant 0 : index
    %c0_258 = arith.constant 0 : index
    %c0_259 = arith.constant 0 : index
    %400 = vector.load %arg2[%c4_256, %c0_257, %c0_258, %c0_259] : memref<5x2x8x1xf32, #tpu.memory_space<vmem>>, vector<1x2x8x1xf32>
    %401 = vector.shape_cast %400 : vector<1x2x8x1xf32> to vector<2x8x1xf32>
    %402 = vector.shape_cast %246 : vector<1x16xf32> to vector<1x1x16xf32>
    %403 = vector.broadcast %401 : vector<2x8x1xf32> to vector<2x8x16xf32>
    %404 = vector.broadcast %402 : vector<1x1x16xf32> to vector<2x8x16xf32>
    %405 = arith.mulf %403, %404 : vector<2x8x16xf32>
    %406 = arith.addf %399, %405 : vector<2x8x16xf32>
    %407 = arith.negf %406 : vector<2x8x16xf32>
    %408 = math.exp %407 : vector<2x8x16xf32>
    %cst_260 = arith.constant 1.000000e+00 : f32
    %409 = vector.broadcast %cst_260 : f32 to vector<2x8x16xf32>
    %410 = arith.addf %409, %408 : vector<2x8x16xf32>
    %411 = arith.divf %409, %410 : vector<2x8x16xf32>
    %412 = arith.mulf %406, %411 : vector<2x8x16xf32>
    %413 = vector.shape_cast %412 : vector<2x8x16xf32> to vector<16x16xf32>
    %c1_261 = arith.constant 1 : index
    %c0_262 = arith.constant 0 : index
    %c0_263 = arith.constant 0 : index
    %414 = vector.load %arg11[%c1_261, %c0_262, %c0_263] : memref<2x16x16xf32, #tpu.memory_space<vmem>>, vector<1x16x16xf32>
    %415 = vector.shape_cast %414 : vector<1x16x16xf32> to vector<16x16xf32>
    %cst_264 = arith.constant dense<0.000000e+00> : vector<16x16xf32>
    %416 = tpu.matmul %413, %415, %cst_264 {dimension_numbers = #tpu.dot_dimension_numbers<[1], [0], [0], [1], [0, 0, 1, 1], [], []>} : vector<16x16xf32>, vector<16x16xf32>, vector<16x16xf32> -> vector<16x16xf32>
    %c1_265 = arith.constant 1 : index
    %c0_266 = arith.constant 0 : index
    %c0_267 = arith.constant 0 : index
    %417 = vector.load %arg12[%c1_265, %c0_266, %c0_267] : memref<2x1x16xf32, #tpu.memory_space<vmem>>, vector<1x1x16xf32>
    %418 = vector.shape_cast %417 : vector<1x1x16xf32> to vector<1x16xf32>
    %419 = vector.broadcast %418 : vector<1x16xf32> to vector<16x16xf32>
    %420 = arith.addf %416, %419 : vector<16x16xf32>
    %421 = arith.negf %420 : vector<16x16xf32>
    %422 = math.exp %421 : vector<16x16xf32>
    %cst_268 = arith.constant 1.000000e+00 : f32
    %423 = vector.broadcast %cst_268 : f32 to vector<16x16xf32>
    %424 = arith.addf %423, %422 : vector<16x16xf32>
    %425 = arith.divf %423, %424 : vector<16x16xf32>
    %426 = arith.mulf %420, %425 : vector<16x16xf32>
    %427 = vector.shape_cast %426 : vector<16x16xf32> to vector<2x8x16xf32>
    %c4_269 = arith.constant 4 : index
    %c0_270 = arith.constant 0 : index
    %c0_271 = arith.constant 0 : index
    %c0_272 = arith.constant 0 : index
    %428 = vector.load %arg3[%c4_269, %c0_270, %c0_271, %c0_272] : memref<5x2x8x1xf32, #tpu.memory_space<vmem>>, vector<1x2x8x1xf32>
    %429 = vector.shape_cast %428 : vector<1x2x8x1xf32> to vector<2x8x1xf32>
    %430 = vector.broadcast %429 : vector<2x8x1xf32> to vector<2x8x16xf32>
    %431 = arith.mulf %427, %430 : vector<2x8x16xf32>
    %432 = arith.addf %395, %431 : vector<2x8x16xf32>
    %c1_273 = arith.constant 1 : index
    %c0_274 = arith.constant 0 : index
    %c0_275 = arith.constant 0 : index
    %433 = vector.load %arg13[%c1_273, %c0_274, %c0_275] : memref<2x32x64xf32, #tpu.memory_space<vmem>>, vector<1x32x64xf32>
    %434 = vector.shape_cast %433 : vector<1x32x64xf32> to vector<32x64xf32>
    %cst_276 = arith.constant dense<0.000000e+00> : vector<16x64xf32>
    %435 = tpu.matmul %232, %434, %cst_276 {dimension_numbers = #tpu.dot_dimension_numbers<[1], [0], [0], [1], [0, 0, 1, 1], [], []>} : vector<16x32xf32>, vector<32x64xf32>, vector<16x64xf32> -> vector<16x64xf32>
    %436 = vector.shape_cast %432 : vector<2x8x16xf32> to vector<16x16xf32>
    %c1_277 = arith.constant 1 : index
    %c0_278 = arith.constant 0 : index
    %c0_279 = arith.constant 0 : index
    %437 = vector.load %arg14[%c1_277, %c0_278, %c0_279] : memref<2x16x64xf32, #tpu.memory_space<vmem>>, vector<1x16x64xf32>
    %438 = vector.shape_cast %437 : vector<1x16x64xf32> to vector<16x64xf32>
    %cst_280 = arith.constant dense<0.000000e+00> : vector<16x64xf32>
    %439 = tpu.matmul %436, %438, %cst_280 {dimension_numbers = #tpu.dot_dimension_numbers<[1], [0], [0], [1], [0, 0, 1, 1], [], []>} : vector<16x16xf32>, vector<16x64xf32>, vector<16x64xf32> -> vector<16x64xf32>
    %440 = arith.addf %435, %439 : vector<16x64xf32>
    %c1_281 = arith.constant 1 : index
    %c0_282 = arith.constant 0 : index
    %c0_283 = arith.constant 0 : index
    %441 = vector.load %arg15[%c1_281, %c0_282, %c0_283] : memref<2x1x64xf32, #tpu.memory_space<vmem>>, vector<1x1x64xf32>
    %442 = vector.shape_cast %441 : vector<1x1x64xf32> to vector<1x64xf32>
    %443 = vector.broadcast %442 : vector<1x64xf32> to vector<16x64xf32>
    %444 = arith.addf %440, %443 : vector<16x64xf32>
    %445 = arith.negf %444 : vector<16x64xf32>
    %446 = math.exp %445 : vector<16x64xf32>
    %cst_284 = arith.constant 1.000000e+00 : f32
    %447 = vector.broadcast %cst_284 : f32 to vector<16x64xf32>
    %448 = arith.addf %447, %446 : vector<16x64xf32>
    %449 = arith.divf %447, %448 : vector<16x64xf32>
    %450 = arith.mulf %444, %449 : vector<16x64xf32>
    %c1_285 = arith.constant 1 : index
    %c0_286 = arith.constant 0 : index
    %c0_287 = arith.constant 0 : index
    %451 = vector.load %arg16[%c1_285, %c0_286, %c0_287] : memref<2x64x32xf32, #tpu.memory_space<vmem>>, vector<1x64x32xf32>
    %452 = vector.shape_cast %451 : vector<1x64x32xf32> to vector<64x32xf32>
    %cst_288 = arith.constant dense<0.000000e+00> : vector<16x32xf32>
    %453 = tpu.matmul %450, %452, %cst_288 {dimension_numbers = #tpu.dot_dimension_numbers<[1], [0], [0], [1], [0, 0, 1, 1], [], []>} : vector<16x64xf32>, vector<64x32xf32>, vector<16x32xf32> -> vector<16x32xf32>
    %c1_289 = arith.constant 1 : index
    %c0_290 = arith.constant 0 : index
    %c0_291 = arith.constant 0 : index
    %454 = vector.load %arg17[%c1_289, %c0_290, %c0_291] : memref<2x1x32xf32, #tpu.memory_space<vmem>>, vector<1x1x32xf32>
    %455 = vector.shape_cast %454 : vector<1x1x32xf32> to vector<1x32xf32>
    %456 = vector.broadcast %455 : vector<1x32xf32> to vector<16x32xf32>
    %457 = arith.addf %453, %456 : vector<16x32xf32>
    %458 = arith.addf %457, %232 : vector<16x32xf32>
    %c0_292 = arith.constant 0 : index
    %c0_293 = arith.constant 0 : index
    %459 = vector.load %arg18[%c0_292, %c0_293] : memref<32x32xf32, #tpu.memory_space<vmem>>, vector<32x32xf32>
    %cst_294 = arith.constant dense<0.000000e+00> : vector<16x32xf32>
    %460 = tpu.matmul %458, %459, %cst_294 {dimension_numbers = #tpu.dot_dimension_numbers<[1], [0], [0], [1], [0, 0, 1, 1], [], []>} : vector<16x32xf32>, vector<32x32xf32>, vector<16x32xf32> -> vector<16x32xf32>
    %c0_295 = arith.constant 0 : index
    %c0_296 = arith.constant 0 : index
    %461 = vector.load %arg19[%c0_295, %c0_296] : memref<1x32xf32, #tpu.memory_space<vmem>>, vector<1x32xf32>
    %462 = vector.broadcast %461 : vector<1x32xf32> to vector<16x32xf32>
    %463 = arith.addf %460, %462 : vector<16x32xf32>
    %464 = arith.negf %463 : vector<16x32xf32>
    %465 = math.exp %464 : vector<16x32xf32>
    %cst_297 = arith.constant 1.000000e+00 : f32
    %466 = vector.broadcast %cst_297 : f32 to vector<16x32xf32>
    %467 = arith.addf %466, %465 : vector<16x32xf32>
    %468 = arith.divf %466, %467 : vector<16x32xf32>
    %469 = arith.mulf %463, %468 : vector<16x32xf32>
    %c0_298 = arith.constant 0 : index
    %c0_299 = arith.constant 0 : index
    %470 = vector.load %arg20[%c0_298, %c0_299] : memref<32x32xf32, #tpu.memory_space<vmem>>, vector<32x32xf32>
    %cst_300 = arith.constant dense<0.000000e+00> : vector<16x32xf32>
    %471 = tpu.matmul %469, %470, %cst_300 {dimension_numbers = #tpu.dot_dimension_numbers<[1], [0], [0], [1], [0, 0, 1, 1], [], []>} : vector<16x32xf32>, vector<32x32xf32>, vector<16x32xf32> -> vector<16x32xf32>
    %c0_301 = arith.constant 0 : index
    %c0_302 = arith.constant 0 : index
    %472 = vector.load %arg21[%c0_301, %c0_302] : memref<1x32xf32, #tpu.memory_space<vmem>>, vector<1x32xf32>
    %473 = vector.broadcast %472 : vector<1x32xf32> to vector<16x32xf32>
    %474 = arith.addf %471, %473 : vector<16x32xf32>
    %475 = vector.shape_cast %474 : vector<16x32xf32> to vector<2x8x32xf32>
    %476 = vector.broadcast %0 : vector<2x8x1xf32> to vector<2x8x32xf32>
    %477 = arith.mulf %475, %476 : vector<2x8x32xf32>
    %cst_303 = arith.constant dense<0.000000e+00> : vector<2x32xf32>
    %478 = vector.multi_reduction <add>, %477, %cst_303 [1] : vector<2x8x32xf32> to vector<2x32xf32>
    %c0_304 = arith.constant 0 : index
    %c0_305 = arith.constant 0 : index
    %479 = vector.load %arg22[%c0_304, %c0_305] : memref<32x32xf32, #tpu.memory_space<vmem>>, vector<32x32xf32>
    %cst_306 = arith.constant dense<0.000000e+00> : vector<2x32xf32>
    %480 = tpu.matmul %478, %479, %cst_306 {dimension_numbers = #tpu.dot_dimension_numbers<[1], [0], [0], [1], [0, 0, 1, 1], [], []>} : vector<2x32xf32>, vector<32x32xf32>, vector<2x32xf32> -> vector<2x32xf32>
    %c0_307 = arith.constant 0 : index
    %c0_308 = arith.constant 0 : index
    %481 = vector.load %arg23[%c0_307, %c0_308] : memref<1x32xf32, #tpu.memory_space<vmem>>, vector<1x32xf32>
    %482 = vector.broadcast %481 : vector<1x32xf32> to vector<2x32xf32>
    %483 = arith.addf %480, %482 : vector<2x32xf32>
    %484 = arith.negf %483 : vector<2x32xf32>
    %485 = math.exp %484 : vector<2x32xf32>
    %cst_309 = arith.constant 1.000000e+00 : f32
    %486 = vector.broadcast %cst_309 : f32 to vector<2x32xf32>
    %487 = arith.addf %486, %485 : vector<2x32xf32>
    %488 = arith.divf %486, %487 : vector<2x32xf32>
    %489 = arith.mulf %483, %488 : vector<2x32xf32>
    %c0_310 = arith.constant 0 : index
    %c0_311 = arith.constant 0 : index
    %490 = vector.load %arg24[%c0_310, %c0_311] : memref<32x16xf32, #tpu.memory_space<vmem>>, vector<32x16xf32>
    %cst_312 = arith.constant dense<0.000000e+00> : vector<2x16xf32>
    %491 = tpu.matmul %489, %490, %cst_312 {dimension_numbers = #tpu.dot_dimension_numbers<[1], [0], [0], [1], [0, 0, 1, 1], [], []>} : vector<2x32xf32>, vector<32x16xf32>, vector<2x16xf32> -> vector<2x16xf32>
    %c0_313 = arith.constant 0 : index
    %c0_314 = arith.constant 0 : index
    %492 = vector.load %arg25[%c0_313, %c0_314] : memref<1x16xf32, #tpu.memory_space<vmem>>, vector<1x16xf32>
    %493 = vector.broadcast %492 : vector<1x16xf32> to vector<2x16xf32>
    %494 = arith.addf %491, %493 : vector<2x16xf32>
    %495 = arith.mulf %494, %494 : vector<2x16xf32>
    %cst_315 = arith.constant dense<0.000000e+00> : vector<2xf32>
    %496 = vector.multi_reduction <add>, %495, %cst_315 [1] : vector<2x16xf32> to vector<2xf32>
    %497 = vector.shape_cast %496 : vector<2xf32> to vector<2x1xf32>
    %498 = math.sqrt %497 : vector<2x1xf32>
    %cst_316 = arith.constant 9.99999993E-9 : f32
    %499 = vector.broadcast %cst_316 : f32 to vector<2x1xf32>
    %500 = arith.maximumf %498, %499 : vector<2x1xf32>
    %501 = vector.broadcast %500 : vector<2x1xf32> to vector<2x16xf32>
    %502 = arith.divf %494, %501 : vector<2x16xf32>
    %c0_317 = arith.constant 0 : index
    %c0_318 = arith.constant 0 : index
    %503 = vector.load %arg26[%c0_317, %c0_318] : memref<2x16xf32, #tpu.memory_space<vmem>>, vector<2x16xf32>
    tpu.vector_store %arg26[%c0_317, %c0_318], %502 {strides = array<i32>} : memref<2x16xf32, #tpu.memory_space<vmem>>, vector<2x16xf32>,
    return
  }
}

</mosaic_0001>

<bundles_post_ra>
// kernel: model_forward.1
= control target key start
LH: loop header
LB: loop body
LE: loop exit
PB: predicated region body
PF: predicated region fallthrough
CT: control target
= control target key end

     0   :  { %s6508_s0 = inlined_call_operand.vmem [shape: f32[16,8], index: 0, kind: input, shape index: {}]   ;;  %s6509_s1 = inlined_call_operand.vmem [shape: f32[5,2,8,8], index: 1, kind: input, shape index: {}]   ;;  %s6510_s2 = inlined_call_operand.vmem [shape: f32[5,2,8,1], index: 2, kind: input, shape index: {}]   ;;  %s6511_s3 = inlined_call_operand.vmem [shape: f32[5,2,8,1], index: 3, kind: input, shape index: {}]   ;;  %s6512_s4 = inlined_call_operand.vmem [shape: f32[2,8,1], index: 4, kind: input, shape index: {}]   ;;  %s6513_s5 = inlined_call_operand.vmem [shape: f32[8,32], index: 5, kind: input, shape index: {}]   ;;  %s6514_s6 = inlined_call_operand.vmem [shape: f32[1,32], index: 6, kind: input, shape index: {}]   ;;  %s6515_s7 = inlined_call_operand.vmem [shape: f32[2,32,16], index: 7, kind: input, shape index: {}]   ;;  %s6516_s8 = inlined_call_operand.vmem [shape: f32[2,32,16], index: 8, kind: input, shape index: {}]   ;;  %s6517_s9 = inlined_call_operand.vmem [shape: f32[2,1,16], index: 9, kind: input, shape index: {}]   ;;  %s6518_s10 = inlined_call_operand.vmem [shape: f32[2,1,16], index: 10, kind: input, shape index: {}]   ;;  %s6519_s11 = inlined_call_operand.vmem [shape: f32[2,16,16], index: 11, kind: input, shape index: {}]   ;;  %s6520_s12 = inlined_call_operand.vmem [shape: f32[2,1,16], index: 12, kind: input, shape index: {}]   ;;  %s6521_s13 = inlined_call_operand.vmem [shape: f32[2,32,64], index: 13, kind: input, shape index: {}]   ;;  %s6522_s14 = inlined_call_operand.vmem [shape: f32[2,16,64], index: 14, kind: input, shape index: {}]   ;;  %s6523_s15 = inlined_call_operand.vmem [shape: f32[2,1,64], index: 15, kind: input, shape index: {}]   ;;  %s6524_s16 = inlined_call_operand.vmem [shape: f32[2,64,32], index: 16, kind: input, shape index: {}]   ;;  %s6525_s17 = inlined_call_operand.vmem [shape: f32[2,1,32], index: 17, kind: input, shape index: {}]   ;;  %s6526_s18 = inlined_call_operand.vmem [shape: f32[32,32], index: 18, kind: input, shape index: {}]   ;;  %s6527_s19 = inlined_call_operand.vmem [shape: f32[1,32], index: 19, kind: input, shape index: {}]   ;;  %s6528_s20 = inlined_call_operand.vmem [shape: f32[32,32], index: 20, kind: input, shape index: {}]   ;;  %s6529_s21 = inlined_call_operand.vmem [shape: f32[1,32], index: 21, kind: input, shape index: {}]   ;;  %s6530_s22 = inlined_call_operand.vmem [shape: f32[32,32], index: 22, kind: input, shape index: {}]   ;;  %s6531_s23 = inlined_call_operand.vmem [shape: f32[1,32], index: 23, kind: input, shape index: {}]   ;;  %s6532_s24 = inlined_call_operand.vmem [shape: f32[32,16], index: 24, kind: input, shape index: {}]   ;;  %s6533_s25 = inlined_call_operand.vmem [shape: f32[1,16], index: 25, kind: input, shape index: {}]   ;;  %s6534_s26 = inlined_call_operand.hbm [shape: f32[2,16], index: 26, kind: output, shape index: {}]  }
   0x1   :  { %6544 = sst [smem:[#allocation5_spill]] %s6508_s0 }
   0x2   :  { %6545 = sst [smem:[#allocation6_spill]] %s6509_s1 }
   0x3   :  { %6546 = sst [smem:[#allocation7_spill]] %s6510_s2 }
   0x4   :  { %6547 = sst [smem:[#allocation8_spill]] %s6511_s3 }
   0x5   :  { %6548 = sst [smem:[#allocation9_spill]] %s6512_s4 }
   0x6   :  { %6549 = sst [smem:[#allocation10_spill]] %s6513_s5 }
   0x7   :  { %6550 = sst [smem:[#allocation11_spill]] %s6514_s6 }
   0x8   :  { %6551 = sst [smem:[#allocation12_spill]] %s6515_s7 }
   0x9   :  { %6552 = sst [smem:[#allocation13_spill]] %s6516_s8 }
   0xa   :  { %6553 = sst [smem:[#allocation14_spill]] %s6517_s9 }
   0xb   :  { %6554 = sst [smem:[#allocation15_spill]] %s6518_s10 }
   0xc   :  { %6555 = sst [smem:[#allocation16_spill]] %s6529_s21 }
   0xd   :  { %s6556_s7 = sld [smem:[#allocation10_spill]]  ;;  %s6557_s21 = sld [smem:[#allocation5_spill]]  ;;  %vm96_vm0 = vcmask 64512  }
   0xe   :  { %s6558_s30 = sld [smem:[#allocation12_spill]]  ;;  %s6559_s1 = sld [smem:[#allocation13_spill]] }
  0x13   :  { %v88_v0 = vld [vmem:[%s6556_s7] sm:$0xff]  ;;  %v87_v2 = vld [vmem:[%s6557_s21 + $0x8] sm:$0xff] }
  0x14   :  { %v86_v1 = vld [vmem:[%s6557_s21] sm:$0xff]  ;;  %4954 = vmatprep.subr.mxu0 %v88_v0  ;;  %v179_v4 = vld [vmem:[%s6558_s30 + $0x8] sm:$0xff] }
  0x15   :  { %4956 = vmatprep.mubr.msk.f32.mxu0 %vm96_vm0, %v86_v1  ;;  %v178_v3 = vld [vmem:[%s6558_s30] sm:$0xff]  ;;  %4955 = vmatpush3.msra.mxu0 %v88_v0  ;;  %v272_v7 = vld [vmem:[%s6559_s1 + $0x8] sm:$0xff] }
  0x16   :  { %v271_v5 = vld [vmem:[%s6559_s1] sm:$0xff]  ;;  %v5291_v6 = vpack.c.bf16 %v179_v4, %v178_v3 }
  0x17   :  { %31 = vsyncpa [#allocation3], 0  ;;  %4957 = vmatmul.mubr.msk.f32.vlgmr.msra.gmra.mrb[0].mxu0 %vm96_vm0, %v87_v2  ;;  %v5299_v8 = vpack.c.bf16 %v272_v7, %v271_v5  ;;  %v180_v9 = vld [vmem:[%s6558_s30 + $0x10] sm:$0xff]  ;;  %v181_v10 = vld [vmem:[%s6558_s30 + $0x18] sm:$0xff]  ;;  %s6560_s10 = sld [smem:[#allocation11_spill]]  ;;  %vm189_vm1 = vcmask 261120  }
  0x18   :  { %5292 = vmatprep.subr.bf16.mxu1 %v5291_v6  ;;  %v273_v11 = vld [vmem:[%s6559_s1 + $0x10] sm:$0xff]  ;;  %v5295_v12 = vpack.c.bf16 %v181_v10, %v180_v9  ;;  %v274_v13 = vld [vmem:[%s6559_s1 + $0x18] sm:$0xff]  ;;  %v5674_v20 = vmov 0.0   ;;  %vm5675_vm2 = vmmov 0   ;;  %v5676_v21 = vmov 0   ;;  %s6561_s3 = sld [smem:[#allocation7_spill]] }
  0x19   :  { %5300 = vmatprep.subr.bf16.mxu0 %v5299_v8  ;;  %5294 = vmatpush3.bf16.msra.mxu1 %v5291_v6  ;;  %v5303_v14 = vpack.c.bf16 %v274_v13, %v273_v11  ;;  %s6562_s27 = sld [smem:[#allocation8_spill]]  ;;  %s6564_s7 = sld [smem:[#allocation6_spill]]  ;;  %v537_v41 = vld [vmem:[%s6519_s11] sm:$0xff]  ;;  %v538_v42 = vld [vmem:[%s6519_s11 + $0x8] sm:$0xff]  ;;  %vm546_vm3 = vcmask 130048   ;;  %vm2070_vm4 = vcmask 523264  }
  0x1a   :  { %5302 = vmatpush3.bf16.msra.mxu0 %v5299_v8  ;;  %5296 = vmatprep.subr.bf16.mxu1 %v5295_v12  ;;  %v5945_v43 = vpack.c.bf16 %v538_v42, %v537_v41  ;;  %s6566_s8 = sld [smem:[#allocation14_spill]]  ;;  %vm4363_vm5 = vcmask 1041409   ;;  %vm4529_vm6 = vcmask 123904  }
  0x1b   :  { %5304 = vmatprep.subr.bf16.mxu0 %v5303_v14  ;;  %5456 = vset.pattern.permute.xlu0 %v5676_v21 }
  0x1c   :  { %5457 = vset.pattern.permute.xlu1 %v5676_v21 }
  0x1d   :  { %5298 = vmatpush3.bf16.msra.mxu1 %v5295_v12  ;;  %v4558_v15 = vld [vmem:[%s6560_s10] ss:$0 sm:$0xff]  ;;  %s6563_s10 = sld [smem:[#allocation9_spill]] }
  0x1e   :  { %5306 = vmatpush3.bf16.msra.mxu0 %v5303_v14  ;;  %v501_v22 = vld [vmem:[%s6561_s3] sm:$0xff]  ;;  %v5873_v23 = vld [vmem:[%s6561_s3 + $0x8] sm:$0xff]  ;;  %v4678_v25 = vld [vmem:[%s6561_s3 + $0x10] sm:$0xff]  ;;  %5308 = vmatprep.subr.bf16.mxu1 %v5945_v43 }
  0x1f   :  { %4981 = vmatprep.subr.mxu0 %v5674_v20  ;;  %505 = vperm.xlu0 %5456, %v501_v22   ;;  %v4595_v24 = vld [vmem:[%s6561_s3 + $0x20] sm:$0xff]  ;;  %v4610_v26 = vld [vmem:[%s6561_s3 + $0x30] sm:$0xff]  ;;  %v643_v29 = vld [vmem:[%s6562_s27 + $0x8] sm:$0xff] }
  0x20   :  { %814 = vperm.xlu1 %5457, %v4678_v25   ;;  %v4625_v27 = vld [vmem:[%s6561_s3 + $0x40] sm:$0xff]  ;;  %v4619_v31 = vld [vmem:[%s6562_s27 + $0x30] sm:$0xff]  ;;  %v5924_v39 = vld [vmem:[%s6564_s7 + $0x8] sm:$0xff] }
  0x21   :  { %v642_v28 = vld [vmem:[%s6562_s27] sm:$0xff]  ;;  %v5935_v40 = vld [vmem:[%s6564_s7 + $0x10] sm:$0xff]  ;;  %v4581_v44 = vld [vmem:[%s6561_s3 + $0x18] sm:$0xff] }
  0x22   :  { %v4604_v30 = vld [vmem:[%s6562_s27 + $0x20] sm:$0xff]  ;;  %v4596_v45 = vld [vmem:[%s6561_s3 + $0x28] sm:$0xff]  ;;  %v4611_v46 = vld [vmem:[%s6561_s3 + $0x38] sm:$0xff] }
  0x23   :  { %510 = vperm.xlu0 %5456, %v5873_v23   ;;  %v4634_v32 = vld [vmem:[%s6562_s27 + $0x40] sm:$0xff]  ;;  %v4626_v47 = vld [vmem:[%s6561_s3 + $0x48] sm:$0xff]  ;;  %v4589_v48 = vld [vmem:[%s6562_s27 + $0x10] sm:$0xff] }
  0x24   :  { %v84_v33 = vld [vmem:[%s6563_s10] sm:$0xff]  ;;  %819 = vperm.xlu1 %5457, %v4581_v44   ;;  %v4590_v49 = vld [vmem:[%s6562_s27 + $0x18] sm:$0xff]  ;;  %v4605_v50 = vld [vmem:[%s6562_s27 + $0x28] sm:$0xff] }
  0x25   :  { %v351_v36 = vld [vmem:[%s6564_s7] sm:$0xff]  ;;  %v4620_v51 = vld [vmem:[%s6562_s27 + $0x38] sm:$0xff]  ;;  %v4635_v52 = vld [vmem:[%s6562_s27 + $0x48] sm:$0xff]  ;;  %s6565_s27 = sld [smem:[#allocation15_spill]] }
  0x26   :  { %v85_v53 = vld [vmem:[%s6563_s10 + $0x8] sm:$0xff]  ;;  %v5990_v55 = vld [vmem:[%s6566_s8] ss:$0 sm:$0xff] }
  0x27   :  { %1117 = vperm.xlu0 %5456, %v4595_v24  }
  0x28   :  { %1122 = vperm.xlu1 %5457, %v4596_v45  }
  0x2b   :  { %1420 = vperm.xlu0 %5456, %v4610_v26   ;;  %v4561_v54 = vld [vmem:[%s6565_s27] ss:$0 sm:$0xff] }
  0x2c   :  { %1425 = vperm.xlu1 %5457, %v4611_v46  }
  0x2f   :  { %1723 = vperm.xlu0 %5456, %v4625_v27  }
  0x30   :  { %1728 = vperm.xlu1 %5457, %v4626_v47  }
  0x33   :  { %646 = vperm.xlu0 %5456, %v642_v28  }
  0x34   :  { %949 = vperm.xlu1 %5457, %v4589_v48  }
  0x37   :  { %651 = vperm.xlu0 %5456, %v643_v29  }
  0x38   :  { %954 = vperm.xlu1 %5457, %v4590_v49  }
  0x3b   :  { %1252 = vperm.xlu0 %5456, %v4604_v30  }
  0x3c   :  { %1257 = vperm.xlu1 %5457, %v4605_v50  }
  0x3f   :  { %1555 = vperm.xlu0 %5456, %v4619_v31  }
  0x40   :  { %1560 = vperm.xlu1 %5457, %v4620_v51  }
  0x43   :  { %1858 = vperm.xlu0 %5456, %v4634_v32  }
  0x44   :  { %1863 = vperm.xlu1 %5457, %v4635_v52  }
  0x47   :  { %2484 = vperm.xlu0 %5456, %v501_v22  }
  0x48   :  { %2489 = vperm.xlu1 %5457, %v5873_v23  }
  0x4b   :  { %2792 = vperm.xlu0 %5456, %v4678_v25  }
  0x4c   :  { %2797 = vperm.xlu1 %5457, %v4581_v44  }
  0x4f   :  { %3092 = vperm.xlu0 %5456, %v4595_v24  }
  0x50   :  { %3097 = vperm.xlu1 %5457, %v4596_v45  }
  0x53   :  { %3392 = vperm.xlu0 %5456, %v4610_v26  }
  0x54   :  { %3397 = vperm.xlu1 %5457, %v4611_v46  }
  0x57   :  { %3692 = vperm.xlu0 %5456, %v4625_v27  }
  0x58   :  { %3697 = vperm.xlu1 %5457, %v4626_v47  }
  0x5b   :  { %2626 = vperm.xlu0 %5456, %v642_v28  }
  0x5c   :  { %2926 = vperm.xlu1 %5457, %v4589_v48  }
  0x5f   :  { %2631 = vperm.xlu0 %5456, %v643_v29   ;;  %v6011_v29 = vld [vmem:[%s6564_s7 + $0x18] sm:$0xff] }
  0x60   :  { %2931 = vperm.xlu1 %5457, %v4590_v49  }
  0x63   :  { %3226 = vperm.xlu0 %5456, %v4604_v30  }
  0x64   :  { %3231 = vperm.xlu1 %5457, %v4605_v50  }
  0x67   :  { %3526 = vperm.xlu0 %5456, %v4619_v31   ;;  %v6023_v31 = vld [vmem:[%s6564_s7 + $0x20] sm:$0xff] }
  0x68   :  { %3531 = vperm.xlu1 %5457, %v4620_v51  }
  0x6b   :  { %3826 = vperm.xlu0 %5456, %v4634_v32  }
  0x6c   :  { %3831 = vperm.xlu1 %5457, %v4635_v52  }
  0x6f   :  { %4326 = vperm.xlu0 %5456, %v84_v33  }
  0x70   :  { %4331 = vperm.xlu1 %5457, %v85_v53  }
  0x9e   :  { %v506_v56 = vpop.permute.xlu0 %505 }
  0x9f   :  { %v519_v58 = vmul.f32 %v5990_v55, %v506_v56  ;;  %v815_v2 = vpop.permute.xlu1 %814 }
  0xa0   :  { %v822_v8 = vmul.f32 %v5990_v55, %v815_v2  ;;  %v6063_v2 = vld [vmem:[%s6520_s12] ss:$0 sm:$0xff] }
  0xa2   :  { %v511_v63 = vpop.permute.xlu0 %510 }
  0xa3   :  { %v520_v3 = vmul.f32 %v5990_v55, %v511_v63  ;;  %v6041_v63 = vld [vmem:[%s6564_s7 + $0x28] sm:$0xff] }
  0xa6   :  { %v1118_v45 = vpop.permute.xlu0 %1117 }
  0xa7   :  { %v1125_v47 = vmul.f32 %v5990_v55, %v1118_v45 }
  0xea   :  { %v4958_v16 = vpop.f32.mrb[0].mxu0 }
  0xeb   :  { %v169_v17 = vpop.f32.mrb[1].mxu0  ;;  %v5854_v19 = vadd.f32 %v4958_v16, %v4558_v15 }
  0xec   :  { %v5852_v18 = vadd.f32 %v4558_v15, %v169_v17 }
  0xee   :  { %4967 = vmatprep.mubr.msk.f32.mxu1 %vm189_vm1, %v5852_v18  ;;  %4978 = vmatprep.mubr.msk.f32.mxu0 %vm189_vm1, %v5852_v18 }
  0xef   :  { %4968 = vmatmul.mubr.msk.f32.vlgmr.msra.gmra.mrb[0].mxu1 %vm189_vm1, %v5854_v19  ;;  %4979 = vmatmul.mubr.msk.f32.vlgmr.msra.gmra.mrb[2].mxu0 %vm189_vm1, %v5854_v19 }
  0xf0   :  { %4983 = vmatprep.mubr.msk.f32.mxu0 %vm5675_vm2, %v5674_v20  ;;  %5310 = vmatpush3.bf16.msra.mxu1 %v5945_v43 }
  0xf1   :  { %5003 = vmatprep.subr.mxu1 %v5674_v20 }
 0x1c2   :  { %v5906_v34 = vpop.f32.mrb[0].mxu1  ;;  %v5908_v35 = vpop.f32.mrb[2].mxu0 }
 0x1c3   :  { %v262_v37 = vpop.f32.mrb[1].mxu1  ;;  %v5913_v38 = vpop.f32.mrb[3].mxu0  ;;  %v5997_v62 = vadd.f32 %v5906_v34, %v4561_v54 }
 0x1c4   :  { %4982 = vmatpush3.msra.mxu0 %v5913_v38  ;;  %v5992_v57 = vadd.f32 %v4561_v54, %v262_v37  ;;  %v820_v34 = vpop.permute.xlu1 %819 }
 0x1c5   :  { %4984 = vmatmul.mubr.msk.f32.vlgmr.msra.gmra.mrb[4].mxu0 %vm96_vm0, %v351_v36  ;;  %4986 = vmatprep.subr.mxu0 %v5674_v20  ;;  %v823_v37 = vmul.f32 %v5990_v55, %v820_v34 }
 0x1c6   :  { %4987 = vmatpush3.msra.mxu0 %v5908_v35  ;;  %4988 = vmatprep.mubr.msk.f32.mxu0 %vm5675_vm2, %v5674_v20 }
 0x1c7   :  { %4998 = vmatprep.subr.mxu0 %v5674_v20 }
 0x1c9   :  { %4989 = vmatmul.mubr.msk.f32.vlgmr.msra.gmra.mrb[6].mxu0 %vm96_vm0, %v5924_v39 }
 0x1ca   :  { %4999 = vmatpush3.msra.mxu0 %v5913_v38  ;;  %5000 = vmatprep.mubr.msk.f32.mxu0 %vm5675_vm2, %v5674_v20 }
 0x1cb   :  { %5312 = vmatprep.subr.bf16.mxu0 %v5945_v43 }
 0x1cd   :  { %5001 = vmatmul.mubr.msk.f32.vlgmr.msra.gmra.mrb[8].mxu0 %vm96_vm0, %v5935_v40 }
 0x1ce   :  { %5314 = vmatpush3.bf16.msra.mxu0 %v5945_v43 }
 0x1cf   :  { %5020 = vmatprep.subr.mxu0 %v5674_v20 }
 0x298   :  { %v422_v59 = vpop.f32.mrb[4].mxu0 }
 0x299   :  { %v499_v60 = vadd.f32 %v422_v59, %v5992_v57  ;;  %v4985_v61 = vpop.f32.mrb[5].mxu0 }
 0x29b   :  { %v521_v0 = vadd.f32 %v519_v58, %v499_v60 }
 0x29c   :  { %v495_v1 = vpop.f32.mrb[6].mxu0 }
 0x29d   :  { %v4569_v4 = vmul.f32 -1.442695, %v521_v0  ;;  %v500_v5 = vadd.f32 %v495_v1, %v5997_v62  ;;  %v4990_v6 = vpop.f32.mrb[7].mxu0  ;;  %v6053_v1 = vld [vmem:[%s6564_s7 + $0x30] sm:$0xff] }
 0x29f   :  { %5458 = vpow2.f32 %v4569_v4  ;;  %v522_v7 = vadd.f32 %v520_v3, %v500_v5 }
 0x2a0   :  { %v730_v9 = vpop.f32.mrb[8].mxu0 }
 0x2a1   :  { %v4570_v10 = vmul.f32 -1.442695, %v522_v7  ;;  %v807_v11 = vadd.f32 %v730_v9, %v5992_v57  ;;  %v5002_v12 = vpop.f32.mrb[9].mxu0 }
 0x2a2   :  { %v1123_v12 = vpop.permute.xlu1 %1122 }
 0x2a3   :  { %5460 = vpow2.f32 %v4570_v10  ;;  %v824_v13 = vadd.f32 %v822_v8, %v807_v11 }
 0x2a5   :  { %v4582_v14 = vmul.f32 -1.442695, %v824_v13 }
 0x2a7   :  { %5462 = vpow2.f32 %v4582_v14 }
 0x2a9   :  { %v5459_v15 = vpop.eup %5458 }
 0x2aa   :  { %v529_v16 = vadd.f32 1.0, %v5459_v15  ;;  %v1126_v15 = vmul.f32 %v5990_v55, %v1123_v12 }
 0x2ac   :  { %5464 = vrcp.f32 %v529_v16 }
 0x2ad   :  { %v5461_v17 = vpop.eup %5460 }
 0x2ae   :  { %v530_v21 = vadd.f32 1.0, %v5461_v17 }
 0x2b0   :  { %5466 = vrcp.f32 %v530_v21 }
 0x2b1   :  { %v5463_v22 = vpop.eup %5462 }
 0x2b2   :  { %v832_v23 = vadd.f32 1.0, %v5463_v22 }
 0x2b4   :  { %5468 = vrcp.f32 %v832_v23 }
 0x2b6   :  { %v5465_v24 = vpop.eup %5464 }
 0x2b7   :  { %v535_v25 = vmul.f32 %v5465_v24, %v521_v0  ;;  %v1421_v24 = vpop.permute.xlu0 %1420 }
 0x2b9   :  { %4995 = vmatprep.mubr.msk.f32.mxu1 %vm546_vm3, %v535_v25 }
 0x2ba   :  { %v5467_v26 = vpop.eup %5466 }
 0x2bb   :  { %v536_v27 = vmul.f32 %v5467_v26, %v522_v7  ;;  %v1428_v26 = vmul.f32 %v5990_v55, %v1421_v24 }
 0x2bd   :  { %4996 = vmatmul.mubr.msk.f32.vlgmr.msra.gmra.mrb[2].mxu1 %vm546_vm3, %v536_v27 }
 0x2be   :  { %v5469_v28 = vpop.eup %5468  ;;  %5004 = vmatpush3.msra.mxu1 %v5908_v35  ;;  %5005 = vmatprep.mubr.msk.f32.mxu1 %vm5675_vm2, %v5674_v20 }
 0x2bf   :  { %v838_v30 = vmul.f32 %v5469_v28, %v824_v13  ;;  %5015 = vmatprep.subr.mxu1 %v5674_v20 }
 0x2c1   :  { %5006 = vmatmul.mubr.msk.f32.vlgmr.msra.gmra.mrb[4].mxu1 %vm96_vm0, %v6011_v29  ;;  %5012 = vmatprep.mubr.msk.f32.mxu0 %vm546_vm3, %v838_v30 }
 0x2c2   :  { %5016 = vmatpush3.msra.mxu1 %v5913_v38  ;;  %5017 = vmatprep.mubr.msk.f32.mxu1 %vm5675_vm2, %v5674_v20 }
 0x2c3   :  { %5316 = vmatprep.subr.bf16.mxu1 %v5945_v43 }
 0x2c5   :  { %5018 = vmatmul.mubr.msk.f32.vlgmr.msra.gmra.mrb[6].mxu1 %vm96_vm0, %v6023_v31 }
 0x2c6   :  { %5318 = vmatpush3.bf16.msra.mxu1 %v5945_v43 }
 0x2c7   :  { %5037 = vmatprep.subr.mxu1 %v5674_v20 }
 0x390   :  { %v4997_v32 = vpop.f32.mrb[2].mxu1 }
 0x391   :  { %v619_v33 = vpop.f32.mrb[3].mxu1  ;;  %v625_v3 = vadd.f32 %v4997_v32, %v6063_v2 }
 0x392   :  { %v620_v4 = vadd.f32 %v6063_v2, %v619_v33 }
 0x393   :  { %v4575_v5 = vmul.f32 -1.442695, %v625_v3 }
 0x394   :  { %v803_v36 = vpop.f32.mrb[4].mxu1  ;;  %v4574_v6 = vmul.f32 -1.442695, %v620_v4 }
 0x395   :  { %v808_v41 = vadd.f32 %v803_v36, %v5997_v62  ;;  %v5007_v42 = vpop.f32.mrb[5].mxu1  ;;  %v1426_v36 = vpop.permute.xlu1 %1425 }
 0x397   :  { %v825_v44 = vadd.f32 %v823_v37, %v808_v41 }
 0x398   :  { %v1033_v46 = vpop.f32.mrb[6].mxu1 }
 0x399   :  { %v4583_v48 = vmul.f32 -1.442695, %v825_v44  ;;  %v1110_v49 = vadd.f32 %v1033_v46, %v5992_v57  ;;  %v5019_v50 = vpop.f32.mrb[7].mxu1  ;;  %v1724_v46 = vpop.permute.xlu0 %1723 }
 0x39b   :  { %5470 = vpow2.f32 %v4583_v48  ;;  %v1127_v51 = vadd.f32 %v1125_v47, %v1110_v49  ;;  %v6073_v47 = vpop.permute.xlu1 %1728 }
 0x39d   :  { %v4597_v52 = vmul.f32 -1.442695, %v1127_v51 }
 0x39f   :  { %5472 = vpow2.f32 %v4597_v52  ;;  %v647_v52 = vpop.permute.xlu0 %646 }
 0x3a5   :  { %v5471_v53 = vpop.eup %5470 }
 0x3a6   :  { %v833_v54 = vadd.f32 1.0, %v5471_v53  ;;  %v950_v53 = vpop.permute.xlu1 %949 }
 0x3a8   :  { %5474 = vrcp.f32 %v833_v54 }
 0x3a9   :  { %v5473_v56 = vpop.eup %5472 }
 0x3aa   :  { %v1135_v58 = vadd.f32 1.0, %v5473_v56 }
 0x3ac   :  { %5476 = vrcp.f32 %v1135_v58 }
 0x3ad   :  { %5478 = vpow2.f32 %v4575_v5  ;;  %v652_v5 = vpop.permute.xlu0 %651 }
 0x3ae   :  { %5480 = vpow2.f32 %v4574_v6  ;;  %v955_v6 = vpop.permute.xlu1 %954 }
 0x3b2   :  { %v5475_v59 = vpop.eup %5474 }
 0x3b3   :  { %v839_v60 = vmul.f32 %v5475_v59, %v825_v44 }
 0x3b5   :  { %5013 = vmatmul.mubr.msk.f32.vlgmr.msra.gmra.mrb[10].mxu0 %vm546_vm3, %v839_v60 }
 0x3b6   :  { %v5477_v61 = vpop.eup %5476  ;;  %5021 = vmatpush3.msra.mxu0 %v5908_v35  ;;  %5022 = vmatprep.mubr.msk.f32.mxu0 %vm5675_vm2, %v5674_v20 }
 0x3b7   :  { %v1141_v0 = vmul.f32 %v5477_v61, %v1127_v51  ;;  %5032 = vmatprep.subr.mxu0 %v5674_v20  ;;  %v5479_v21 = vpop.eup %5478 }
 0x3b8   :  { %v5481_v22 = vpop.eup %5480  ;;  %v635_v27 = vadd.f32 1.0, %v5479_v21 }
 0x3b9   :  { %5023 = vmatmul.mubr.msk.f32.vlgmr.msra.gmra.mrb[12].mxu0 %vm96_vm0, %v6041_v63  ;;  %5029 = vmatprep.mubr.msk.f32.mxu1 %vm546_vm3, %v1141_v0  ;;  %v634_v33 = vadd.f32 1.0, %v5481_v22 }
 0x3ba   :  { %5033 = vmatpush3.msra.mxu0 %v5913_v38  ;;  %5034 = vmatprep.mubr.msk.f32.mxu0 %vm5675_vm2, %v5674_v20 }
 0x3bb   :  { %5320 = vmatprep.subr.bf16.mxu0 %v5945_v43 }
 0x3bd   :  { %5035 = vmatmul.mubr.msk.f32.vlgmr.msra.gmra.mrb[14].mxu0 %vm96_vm0, %v6053_v1 }
 0x3be   :  { %5322 = vmatpush3.bf16.msra.mxu0 %v5945_v43 }
 0x3bf   :  { %5054 = vmatprep.subr.mxu0 %v5674_v20 }
 0x488   :  { %v5014_v7 = vpop.f32.mrb[10].mxu0 }
 0x489   :  { %v927_v8 = vadd.f32 %v5014_v7, %v6063_v2  ;;  %v921_v9 = vpop.f32.mrb[11].mxu0 }
 0x48a   :  { %v922_v10 = vadd.f32 %v6063_v2, %v921_v9 }
 0x48b   :  { %v4588_v11 = vmul.f32 -1.442695, %v927_v8 }
 0x48c   :  { %v4587_v13 = vmul.f32 -1.442695, %v922_v10  ;;  %v1106_v14 = vpop.f32.mrb[12].mxu0 }
 0x48d   :  { %5482 = vpow2.f32 %v4588_v11  ;;  %v1111_v16 = vadd.f32 %v1106_v14, %v5997_v62  ;;  %v5024_v17 = vpop.f32.mrb[13].mxu0 }
 0x48e   :  { %5484 = vpow2.f32 %v4587_v13 }
 0x48f   :  { %v1128_v23 = vadd.f32 %v1126_v15, %v1111_v16 }
 0x490   :  { %v1336_v25 = vpop.f32.mrb[14].mxu0 }
 0x491   :  { %v4598_v28 = vmul.f32 -1.442695, %v1128_v23  ;;  %v1413_v30 = vadd.f32 %v1336_v25, %v5992_v57  ;;  %v5036_v32 = vpop.f32.mrb[15].mxu0 }
 0x493   :  { %5486 = vpow2.f32 %v4598_v28  ;;  %v1430_v34 = vadd.f32 %v1428_v26, %v1413_v30 }
 0x494   :  { %5488 = vrcp.f32 %v635_v27  ;;  %v1429_v27 = vmul.f32 %v5990_v55, %v1426_v36 }
 0x495   :  { %v4612_v37 = vmul.f32 -1.442695, %v1430_v34  ;;  %5490 = vrcp.f32 %v634_v33 }
 0x497   :  { %v5483_v41 = vpop.eup %5482  ;;  %5492 = vpow2.f32 %v4612_v37 }
 0x498   :  { %v5485_v42 = vpop.eup %5484  ;;  %v937_v44 = vadd.f32 1.0, %v5483_v41 }
 0x499   :  { %v936_v45 = vadd.f32 1.0, %v5485_v42 }
 0x49a   :  { %5494 = vrcp.f32 %v937_v44 }
 0x49b   :  { %5496 = vrcp.f32 %v936_v45 }
 0x49d   :  { %v5487_v48 = vpop.eup %5486 }
 0x49e   :  { %v1136_v49 = vadd.f32 1.0, %v5487_v48  ;;  %v5489_v50 = vpop.eup %5488 }
 0x49f   :  { %v5491_v51 = vpop.eup %5490  ;;  %v641_v58 = vmul.f32 %v5489_v50, %v625_v3  ;;  %v6082_v3 = vld [vmem:[%s6564_s7 + $0x38] sm:$0xff] }
 0x4a0   :  { %5498 = vrcp.f32 %v1136_v49  ;;  %v640_v60 = vmul.f32 %v5491_v51, %v620_v4 }
 0x4a1   :  { %v5493_v54 = vpop.eup %5492  ;;  %v655_v9 = vmul.f32 %v652_v5, %v641_v58 }
 0x4a2   :  { %v1438_v56 = vadd.f32 1.0, %v5493_v54  ;;  %v654_v12 = vmul.f32 %v647_v52, %v640_v60 }
 0x4a4   :  { %v5495_v59 = vpop.eup %5494  ;;  %5500 = vrcp.f32 %v1438_v56  ;;  %v1258_v56 = vpop.permute.xlu1 %1257 }
 0x4a5   :  { %v5497_v61 = vpop.eup %5496  ;;  %v943_v0 = vmul.f32 %v5495_v59, %v927_v8  ;;  %v6094_v8 = vld [vmem:[%s6564_s7 + $0x40] sm:$0xff]  ;;  %v1253_v59 = vpop.permute.xlu0 %1252 }
 0x4a6   :  { %v942_v7 = vmul.f32 %v5497_v61, %v922_v10 }
 0x4a7   :  { %v958_v11 = vmul.f32 %v955_v6, %v943_v0 }
 0x4a8   :  { %v957_v13 = vmul.f32 %v950_v53, %v942_v7 }
 0x4a9   :  { %v960_v14 = vadd.f32 %v958_v11, %v655_v9  ;;  %v6113_v11 = vld [vmem:[%s6564_s7 + $0x48] sm:$0xff] }
 0x4aa   :  { %v5499_v15 = vpop.eup %5498  ;;  %v959_v16 = vadd.f32 %v957_v13, %v654_v12 }
 0x4ab   :  { %v1142_v17 = vmul.f32 %v5499_v15, %v1128_v23 }
 0x4ad   :  { %5030 = vmatmul.mubr.msk.f32.vlgmr.msra.gmra.mrb[8].mxu1 %vm546_vm3, %v1142_v17 }
 0x4ae   :  { %v5501_v21 = vpop.eup %5500  ;;  %5038 = vmatpush3.msra.mxu1 %v5908_v35  ;;  %5039 = vmatprep.mubr.msk.f32.mxu1 %vm5675_vm2, %v5674_v20 }
 0x4af   :  { %v1444_v4 = vmul.f32 %v5501_v21, %v1430_v34  ;;  %5049 = vmatprep.subr.mxu1 %v5674_v20 }
 0x4b1   :  { %5040 = vmatmul.mubr.msk.f32.vlgmr.msra.gmra.mrb[10].mxu1 %vm96_vm0, %v6082_v3  ;;  %5046 = vmatprep.mubr.msk.f32.mxu0 %vm546_vm3, %v1444_v4  ;;  %v1732_v4 = vmul.f32 %v5990_v55, %v6073_v47  ;;  %v1561_v47 = vpop.permute.xlu1 %1560 }
 0x4b2   :  { %5050 = vmatpush3.msra.mxu1 %v5913_v38  ;;  %5051 = vmatprep.mubr.msk.f32.mxu1 %vm5675_vm2, %v5674_v20 }
 0x4b3   :  { %5324 = vmatprep.subr.bf16.mxu1 %v5945_v43 }
 0x4b5   :  { %5052 = vmatmul.mubr.msk.f32.vlgmr.msra.gmra.mrb[12].mxu1 %vm96_vm0, %v6094_v8 }
 0x4b6   :  { %5326 = vmatpush3.bf16.msra.mxu1 %v5945_v43  ;;  %v1731_v43 = vmul.f32 %v5990_v55, %v1724_v46 }
 0x580   :  { %v5031_v10 = vpop.f32.mrb[8].mxu1 }
 0x581   :  { %v1230_v22 = vadd.f32 %v5031_v10, %v6063_v2  ;;  %v1224_v23 = vpop.f32.mrb[9].mxu1 }
 0x582   :  { %v1225_v38 = vadd.f32 %v6063_v2, %v1224_v23 }
 0x583   :  { %v4603_v24 = vmul.f32 -1.442695, %v1230_v22 }
 0x584   :  { %v4602_v25 = vmul.f32 -1.442695, %v1225_v38  ;;  %v1409_v26 = vpop.f32.mrb[10].mxu1 }
 0x585   :  { %5502 = vpow2.f32 %v4603_v24  ;;  %v1414_v28 = vadd.f32 %v1409_v26, %v5997_v62  ;;  %v5041_v30 = vpop.f32.mrb[11].mxu1 }
 0x586   :  { %5504 = vpow2.f32 %v4602_v25 }
 0x587   :  { %v1431_v32 = vadd.f32 %v1429_v27, %v1414_v28 }
 0x588   :  { %v1639_v33 = vpop.f32.mrb[12].mxu1 }
 0x589   :  { %v4613_v34 = vmul.f32 -1.442695, %v1431_v32  ;;  %v1716_v37 = vadd.f32 %v1639_v33, %v5992_v57  ;;  %v5053_v41 = vpop.f32.mrb[13].mxu1 }
 0x58b   :  { %5506 = vpow2.f32 %v4613_v34  ;;  %v1733_v42 = vadd.f32 %v1731_v43, %v1716_v37 }
 0x58d   :  { %v4627_v44 = vmul.f32 -1.442695, %v1733_v42 }
 0x58f   :  { %v5503_v45 = vpop.eup %5502  ;;  %5508 = vpow2.f32 %v4627_v44 }
 0x590   :  { %v5505_v48 = vpop.eup %5504  ;;  %v1240_v36 = vadd.f32 1.0, %v5503_v45 }
 0x591   :  { %v1239_v49 = vadd.f32 1.0, %v5505_v48  ;;  %v1874_v48 = vld [vmem:[%s6522_s14] sm:$0xff] }
 0x592   :  { %5510 = vrcp.f32 %v1240_v36  ;;  %v1875_v36 = vld [vmem:[%s6522_s14 + $0x8] sm:$0xff] }
 0x593   :  { %5512 = vrcp.f32 %v1239_v49  ;;  %v5327_v49 = vpack.c.bf16 %v1875_v36, %v1874_v48 }
 0x595   :  { %v5507_v50 = vpop.eup %5506 }
 0x596   :  { %v1439_v51 = vadd.f32 1.0, %v5507_v50  ;;  %v1870_v50 = vld [vmem:[%s6521_s13] sm:$0xff] }
 0x598   :  { %5514 = vrcp.f32 %v1439_v51  ;;  %v1871_v51 = vld [vmem:[%s6521_s13 + $0x8] sm:$0xff] }
 0x599   :  { %v5509_v52 = vpop.eup %5508 }
 0x59a   :  { %v1741_v53 = vadd.f32 1.0, %v5509_v52  ;;  %v5331_v52 = vpack.c.bf16 %v1871_v51, %v1870_v50 }
 0x59c   :  { %v5511_v46 = vpop.eup %5510  ;;  %5516 = vrcp.f32 %v1741_v53 }
 0x59d   :  { %v5513_v54 = vpop.eup %5512  ;;  %v1246_v57 = vmul.f32 %v5511_v46, %v1230_v22 }
 0x59e   :  { %v1245_v58 = vmul.f32 %v5513_v54, %v1225_v38 }
 0x59f   :  { %v1261_v60 = vmul.f32 %v1258_v56, %v1246_v57 }
 0x5a0   :  { %v1260_v61 = vmul.f32 %v1253_v59, %v1245_v58 }
 0x5a1   :  { %v1263_v0 = vadd.f32 %v1261_v60, %v960_v14 }
 0x5a2   :  { %v5515_v5 = vpop.eup %5514  ;;  %v1262_v6 = vadd.f32 %v1260_v61, %v959_v16 }
 0x5a3   :  { %v1445_v7 = vmul.f32 %v5515_v5, %v1431_v32 }
 0x5a5   :  { %5047 = vmatmul.mubr.msk.f32.vlgmr.msra.gmra.mrb[16].mxu0 %vm546_vm3, %v1445_v7 }
 0x5a6   :  { %v5517_v9 = vpop.eup %5516  ;;  %5055 = vmatpush3.msra.mxu0 %v5908_v35  ;;  %5056 = vmatprep.mubr.msk.f32.mxu0 %vm5675_vm2, %v5674_v20 }
 0x5a7   :  { %v1747_v12 = vmul.f32 %v5517_v9, %v1733_v42  ;;  %5328 = vmatprep.subr.bf16.mxu0 %v5327_v49  ;;  %v1864_v9 = vpop.permute.xlu1 %1863 }
 0x5a9   :  { %5057 = vmatmul.mubr.msk.f32.vlgmr.msra.gmra.mrb[18].mxu0 %vm96_vm0, %v6113_v11  ;;  %5063 = vmatprep.mubr.msk.f32.mxu1 %vm546_vm3, %v1747_v12 }
 0x5aa   :  { %5330 = vmatpush3.bf16.msra.mxu0 %v5327_v49 }
 0x5ab   :  { %5332 = vmatprep.subr.bf16.mxu0 %v5331_v52 }
 0x678   :  { %v5048_v13 = vpop.f32.mrb[16].mxu0 }
 0x679   :  { %v1533_v14 = vadd.f32 %v5048_v13, %v6063_v2  ;;  %v1527_v15 = vpop.f32.mrb[17].mxu0 }
 0x67a   :  { %v1528_v35 = vadd.f32 %v6063_v2, %v1527_v15 }
 0x67b   :  { %v4618_v16 = vmul.f32 -1.442695, %v1533_v14 }
 0x67c   :  { %v4617_v17 = vmul.f32 -1.442695, %v1528_v35  ;;  %v1712_v21 = vpop.f32.mrb[18].mxu0 }
 0x67d   :  { %5518 = vpow2.f32 %v4618_v16  ;;  %v1717_v10 = vadd.f32 %v1712_v21, %v5997_v62  ;;  %v5058_v22 = vpop.f32.mrb[19].mxu0  ;;  %v1556_v62 = vpop.permute.xlu0 %1555 }
 0x67e   :  { %5520 = vpow2.f32 %v4617_v17 }
 0x67f   :  { %v1734_v23 = vadd.f32 %v1732_v4, %v1717_v10  ;;  %v2055_v4 = vld [vmem:[%s6524_s16] sm:$0xff]  ;;  %v2056_v10 = vld [vmem:[%s6524_s16 + $0x8] sm:$0xff] }
 0x680   :  { %v5339_v22 = vpack.c.bf16 %v2056_v10, %v2055_v4 }
 0x681   :  { %v4628_v38 = vmul.f32 -1.442695, %v1734_v23  ;;  %v1859_v13 = vpop.permute.xlu0 %1858 }
 0x682   :  { %5340 = vmatprep.subr.bf16.mxu1 %v5339_v22 }
 0x683   :  { %5522 = vpow2.f32 %v4628_v38  ;;  %v2058_v38 = vld [vmem:[%s6524_s16 + $0x18] sm:$0xff] }
 0x685   :  { %v2485_v10 = vpop.permute.xlu0 %2484 }
 0x687   :  { %v5519_v24 = vpop.eup %5518 }
 0x688   :  { %v5521_v25 = vpop.eup %5520  ;;  %v1543_v26 = vadd.f32 1.0, %v5519_v24 }
 0x689   :  { %v1542_v27 = vadd.f32 1.0, %v5521_v25  ;;  %v2059_v25 = vld [vmem:[%s6524_s16 + $0x20] sm:$0xff] }
 0x68a   :  { %5524 = vrcp.f32 %v1543_v26  ;;  %v2060_v26 = vld [vmem:[%s6524_s16 + $0x28] sm:$0xff] }
 0x68b   :  { %5526 = vrcp.f32 %v1542_v27  ;;  %v5347_v27 = vpack.c.bf16 %v2060_v26, %v2059_v25 }
 0x68d   :  { %v5523_v28 = vpop.eup %5522 }
 0x68e   :  { %v1742_v30 = vadd.f32 1.0, %v5523_v28  ;;  %v2061_v28 = vld [vmem:[%s6524_s16 + $0x30] sm:$0xff] }
 0x690   :  { %5528 = vrcp.f32 %v1742_v30  ;;  %v2062_v30 = vld [vmem:[%s6524_s16 + $0x38] sm:$0xff] }
 0x694   :  { %v5525_v32 = vpop.eup %5524 }
 0x695   :  { %v5527_v33 = vpop.eup %5526  ;;  %v1549_v55 = vmul.f32 %v5525_v32, %v1533_v14  ;;  %v5351_v32 = vpack.c.bf16 %v2062_v30, %v2061_v28 }
 0x696   :  { %v1548_v43 = vmul.f32 %v5527_v33, %v1528_v35  ;;  %v1873_v35 = vld [vmem:[%s6521_s13 + $0x18] sm:$0xff]  ;;  %v4646_v33 = vld [vmem:[%s6558_s30 + $0x20] sm:$0xff] }
 0x697   :  { %v1564_v34 = vmul.f32 %v1561_v47, %v1549_v55  ;;  %v4647_v55 = vld [vmem:[%s6558_s30 + $0x28] sm:$0xff]  ;;  %v4654_v47 = vld [vmem:[%s6559_s1 + $0x20] sm:$0xff] }
 0x698   :  { %v1563_v37 = vmul.f32 %v1556_v62, %v1548_v43  ;;  %v5355_v43 = vpack.c.bf16 %v4647_v55, %v4646_v33  ;;  %v4655_v62 = vld [vmem:[%s6559_s1 + $0x28] sm:$0xff] }
 0x699   :  { %v1566_v41 = vadd.f32 %v1564_v34, %v1263_v0  ;;  %v5363_v34 = vpack.c.bf16 %v4655_v62, %v4654_v47 }
 0x69a   :  { %v5529_v42 = vpop.eup %5528  ;;  %v1565_v44 = vadd.f32 %v1563_v37, %v1262_v6  ;;  %v4640_v37 = vld [vmem:[%s6523_s15] ss:$0 sm:$0xff] }
 0x69b   :  { %v1748_v45 = vmul.f32 %v5529_v42, %v1734_v23  ;;  %v2057_v23 = vld [vmem:[%s6524_s16 + $0x10] sm:$0xff] }
 0x69c   :  { %v5343_v24 = vpack.c.bf16 %v2058_v38, %v2057_v23 }
 0x69d   :  { %5064 = vmatmul.mubr.msk.f32.vlgmr.msra.gmra.mrb[14].mxu1 %vm546_vm3, %v1748_v45 }
 0x69e   :  { %5342 = vmatpush3.bf16.msra.mxu1 %v5339_v22 }
 0x69f   :  { %5344 = vmatprep.subr.bf16.mxu1 %v5343_v24 }
 0x6a2   :  { %5346 = vmatpush3.bf16.msra.mxu1 %v5343_v24 }
 0x6a3   :  { %5348 = vmatprep.subr.bf16.mxu1 %v5347_v27 }
 0x6a6   :  { %5350 = vmatpush3.bf16.msra.mxu1 %v5347_v27  ;;  %v2490_v27 = vpop.permute.xlu1 %2489 }
 0x6a7   :  { %5352 = vmatprep.subr.bf16.mxu1 %v5351_v32 }
 0x6aa   :  { %5354 = vmatpush3.bf16.msra.mxu1 %v5351_v32 }
 0x6ab   :  { %5364 = vmatprep.subr.bf16.mxu1 %v5363_v34 }
 0x770   :  { %v5065_v53 = vpop.f32.mrb[14].mxu1 }
 0x771   :  { %v1836_v46 = vadd.f32 %v5065_v53, %v6063_v2  ;;  %v1830_v54 = vpop.f32.mrb[15].mxu1 }
 0x772   :  { %v1831_v57 = vadd.f32 %v6063_v2, %v1830_v54  ;;  %v1872_v2 = vld [vmem:[%s6521_s13 + $0x10] sm:$0xff] }
 0x773   :  { %v4633_v56 = vmul.f32 -1.442695, %v1836_v46  ;;  %v5335_v21 = vpack.c.bf16 %v1873_v35, %v1872_v2 }
 0x774   :  { %v4632_v58 = vmul.f32 -1.442695, %v1831_v57 }
 0x775   :  { %5530 = vpow2.f32 %v4633_v56  ;;  %v4648_v56 = vld [vmem:[%s6558_s30 + $0x30] sm:$0xff] }
 0x776   :  { %5532 = vpow2.f32 %v4632_v58  ;;  %v4649_v58 = vld [vmem:[%s6558_s30 + $0x38] sm:$0xff] }
 0x77f   :  { %v5531_v59 = vpop.eup %5530 }
 0x780   :  { %v5533_v60 = vpop.eup %5532  ;;  %v1846_v61 = vadd.f32 1.0, %v5531_v59  ;;  %v4656_v59 = vld [vmem:[%s6559_s1 + $0x30] sm:$0xff] }
 0x781   :  { %v1845_v0 = vadd.f32 1.0, %v5533_v60  ;;  %v5359_v60 = vpack.c.bf16 %v4649_v58, %v4648_v56 }
 0x782   :  { %5534 = vrcp.f32 %v1846_v61  ;;  %v4657_v61 = vld [vmem:[%s6559_s1 + $0x38] sm:$0xff] }
 0x783   :  { %5536 = vrcp.f32 %v1845_v0  ;;  %v5367_v0 = vpack.c.bf16 %v4657_v61, %v4656_v59  ;;  %v2798_v61 = vpop.permute.xlu1 %2797 }
 0x78c   :  { %v5535_v5 = vpop.eup %5534 }
 0x78d   :  { %v5537_v6 = vpop.eup %5536  ;;  %v1852_v7 = vmul.f32 %v5535_v5, %v1836_v46  ;;  %v4643_v5 = vld [vmem:[%s6525_s17] ss:$0 sm:$0xff] }
 0x78e   :  { %v1851_v12 = vmul.f32 %v5537_v6, %v1831_v57 }
 0x78f   :  { %v1867_v14 = vmul.f32 %v1864_v9, %v1852_v7 }
 0x790   :  { %v1866_v15 = vmul.f32 %v1859_v13, %v1851_v12 }
 0x791   :  { %v1869_v16 = vadd.f32 %v1867_v14, %v1566_v41 }
 0x792   :  { %v1868_v17 = vadd.f32 %v1866_v15, %v1565_v44 }
 0x794   :  { %5070 = vmatprep.mubr.msk.f32.mxu0 %vm546_vm3, %v1868_v17  ;;  %v4667_v17 = vld [vmem:[%s6519_s11 + $0x18] sm:$0xff] }
 0x795   :  { %5071 = vmatmul.mubr.msk.f32.vlgmr.msra.gmra.mrb[20].mxu0 %vm546_vm3, %v1869_v16  ;;  %v4666_v16 = vld [vmem:[%s6519_s11 + $0x10] sm:$0xff] }
 0x796   :  { %5334 = vmatpush3.bf16.msra.mxu0 %v5331_v52  ;;  %5081 = vmatprep.mubr.msk.f32.mxu0 %vm189_vm1, %v5852_v18 }
 0x797   :  { %5336 = vmatprep.subr.bf16.mxu0 %v5335_v21 }
 0x79a   :  { %5338 = vmatpush3.bf16.msra.mxu0 %v5335_v21  ;;  %v6250_v21 = vpack.c.bf16 %v4667_v17, %v4666_v16 }
 0x79b   :  { %5356 = vmatprep.subr.bf16.mxu0 %v5355_v43 }
 0x79d   :  { %5082 = vmatmul.mubr.msk.f32.vlgmr.msra.gmra.mrb[20].mxu0 %vm189_vm1, %v5854_v19 }
 0x79e   :  { %5358 = vmatpush3.bf16.msra.mxu0 %v5355_v43  ;;  %v2793_v43 = vpop.permute.xlu0 %2792 }
 0x79f   :  { %5360 = vmatprep.subr.bf16.mxu0 %v5359_v60 }
 0x7a2   :  { %5362 = vmatpush3.bf16.msra.mxu0 %v5359_v60 }
 0x7a3   :  { %5125 = vmatprep.subr.mxu0 %v5674_v20 }
 0x870   :  { %v5083_v41 = vpop.f32.mrb[20].mxu0 }
 0x871   :  { %v2040_v42 = vadd.f32 %v5083_v41, %v4640_v37  ;;  %v2023_v44 = vpop.f32.mrb[21].mxu0 }
 0x872   :  { %v2039_v45 = vadd.f32 %v4640_v37, %v2023_v44 }
 0x873   :  { %v4642_v48 = vmul.f32 -1.442695, %v2040_v42 }
 0x874   :  { %v4641_v36 = vmul.f32 -1.442695, %v2039_v45 }
 0x875   :  { %5538 = vpow2.f32 %v4642_v48 }
 0x876   :  { %5540 = vpow2.f32 %v4641_v36 }
 0x87f   :  { %v5539_v49 = vpop.eup %5538 }
 0x880   :  { %v5541_v50 = vpop.eup %5540  ;;  %v2048_v51 = vadd.f32 1.0, %v5539_v49 }
 0x881   :  { %v2047_v52 = vadd.f32 1.0, %v5541_v50 }
 0x882   :  { %5542 = vrcp.f32 %v2048_v51 }
 0x883   :  { %5544 = vrcp.f32 %v2047_v52 }
 0x88c   :  { %v5543_v53 = vpop.eup %5542 }
 0x88d   :  { %v5545_v46 = vpop.eup %5544  ;;  %v2054_v57 = vmul.f32 %v5543_v53, %v2040_v42 }
 0x88e   :  { %v2053_v54 = vmul.f32 %v5545_v46, %v2039_v45 }
 0x890   :  { %5100 = vmatprep.mubr.msk.f32.mxu1 %vm2070_vm4, %v2053_v54 }
 0x891   :  { %5101 = vmatmul.mubr.msk.f32.vlgmr.msra.gmra.mrb[16].mxu1 %vm2070_vm4, %v2054_v57 }
 0x892   :  { %5366 = vmatpush3.bf16.msra.mxu1 %v5363_v34 }
 0x893   :  { %5368 = vmatprep.subr.bf16.mxu1 %v5367_v0 }
 0x896   :  { %5370 = vmatpush3.bf16.msra.mxu1 %v5367_v0 }
 0x897   :  { %5372 = vmatprep.subr.bf16.mxu1 %v6250_v21 }
 0x964   :  { %v5102_v6 = vpop.f32.mrb[16].mxu1 }
 0x965   :  { %v2149_v7 = vadd.f32 %v5102_v6, %v4643_v5  ;;  %v2143_v9 = vpop.f32.mrb[17].mxu1 }
 0x966   :  { %v2144_v12 = vadd.f32 %v4643_v5, %v2143_v9  ;;  %v3093_v9 = vpop.permute.xlu0 %3092 }
 0x967   :  { %v6211_v14 = vadd.f32 %v2149_v7, %v5854_v19  ;;  %v2330_v19 = vld [vmem:[%s6564_s7] sm:$0xff] }
 0x968   :  { %v6208_v13 = vadd.f32 %v2144_v12, %v5852_v18 }
 0x96a   :  { %5111 = vmatprep.mubr.msk.f32.mxu0 %vm189_vm1, %v6208_v13  ;;  %5122 = vmatprep.mubr.msk.f32.mxu1 %vm189_vm1, %v6208_v13 }
 0x96b   :  { %5112 = vmatmul.mubr.msk.f32.vlgmr.msra.gmra.mrb[22].mxu0 %vm189_vm1, %v6211_v14  ;;  %5123 = vmatmul.mubr.msk.f32.vlgmr.msra.gmra.mrb[18].mxu1 %vm189_vm1, %v6211_v14 }
 0x96c   :  { %5127 = vmatprep.mubr.msk.f32.mxu0 %vm5675_vm2, %v5674_v20  ;;  %5374 = vmatpush3.bf16.msra.mxu1 %v6250_v21 }
 0x96d   :  { %5147 = vmatprep.subr.mxu1 %v5674_v20 }
 0xa3e   :  { %v5113_v18 = vpop.f32.mrb[22].mxu0  ;;  %v6223_v15 = vpop.f32.mrb[18].mxu1 }
 0xa3f   :  { %v2239_v2 = vpop.f32.mrb[23].mxu0  ;;  %v6228_v35 = vpop.f32.mrb[19].mxu1 }
 0xa40   :  { %5126 = vmatpush3.msra.mxu0 %v6228_v35 }
 0xa41   :  { %5128 = vmatmul.mubr.msk.f32.vlgmr.msra.gmra.mrb[24].mxu0 %vm96_vm0, %v2330_v19  ;;  %5130 = vmatprep.subr.mxu0 %v5674_v20 }
 0xa42   :  { %5131 = vmatpush3.msra.mxu0 %v6223_v15  ;;  %5132 = vmatprep.mubr.msk.f32.mxu0 %vm5675_vm2, %v5674_v20 }
 0xa43   :  { %5142 = vmatprep.subr.mxu0 %v5674_v20 }
 0xa45   :  { %5133 = vmatmul.mubr.msk.f32.vlgmr.msra.gmra.mrb[26].mxu0 %vm96_vm0, %v5924_v39  ;;  %v4651_v39 = vld [vmem:[%s6565_s27 + $0x1] ss:$0 sm:$0xff] }
 0xa46   :  { %5143 = vmatpush3.msra.mxu0 %v6228_v35  ;;  %5144 = vmatprep.mubr.msk.f32.mxu0 %vm5675_vm2, %v5674_v20  ;;  %v6266_v4 = vadd.f32 %v4651_v39, %v2239_v2  ;;  %v6270_v25 = vadd.f32 %v5113_v18, %v4651_v39 }
 0xa47   :  { %5376 = vmatprep.subr.bf16.mxu0 %v6250_v21 }
 0xa49   :  { %5145 = vmatmul.mubr.msk.f32.vlgmr.msra.gmra.mrb[28].mxu0 %vm96_vm0, %v5935_v40  ;;  %v6264_v40 = vld [vmem:[%s6566_s8 + $0x1] ss:$0 sm:$0xff] }
 0xa4a   :  { %5378 = vmatpush3.bf16.msra.mxu0 %v6250_v21  ;;  %v2498_v23 = vmul.f32 %v6264_v40, %v2485_v10  ;;  %v2499_v30 = vmul.f32 %v6264_v40, %v2490_v27  ;;  %v2800_v34 = vmul.f32 %v6264_v40, %v2793_v43  ;;  %v2801_v0 = vmul.f32 %v6264_v40, %v2798_v61 }
 0xa4b   :  { %5164 = vmatprep.subr.mxu0 %v5674_v20  ;;  %v3100_v18 = vmul.f32 %v6264_v40, %v3093_v9 }
 0xb14   :  { %v2401_v22 = vpop.f32.mrb[24].mxu0 }
 0xb15   :  { %v2478_v38 = vadd.f32 %v2401_v22, %v6266_v4  ;;  %v5129_v24 = vpop.f32.mrb[25].mxu0 }
 0xb17   :  { %v2500_v26 = vadd.f32 %v2498_v23, %v2478_v38 }
 0xb18   :  { %v2474_v28 = vpop.f32.mrb[26].mxu0 }
 0xb19   :  { %v4664_v32 = vmul.f32 -1.442695, %v2500_v26  ;;  %v2479_v33 = vadd.f32 %v2474_v28, %v6270_v25  ;;  %v5134_v55 = vpop.f32.mrb[27].mxu0 }
 0xb1b   :  { %5546 = vpow2.f32 %v4664_v32  ;;  %v2501_v47 = vadd.f32 %v2499_v30, %v2479_v33 }
 0xb1c   :  { %v2709_v62 = vpop.f32.mrb[28].mxu0 }
 0xb1d   :  { %v4665_v37 = vmul.f32 -1.442695, %v2501_v47  ;;  %v2786_v41 = vadd.f32 %v2709_v62, %v6266_v4  ;;  %v5146_v42 = vpop.f32.mrb[29].mxu0 }
 0xb1f   :  { %5548 = vpow2.f32 %v4665_v37  ;;  %v2802_v44 = vadd.f32 %v2800_v34, %v2786_v41  ;;  %v3098_v34 = vpop.permute.xlu1 %3097 }
 0xb20   :  { %v3101_v42 = vmul.f32 %v6264_v40, %v3098_v34 }
 0xb21   :  { %v4680_v45 = vmul.f32 -1.442695, %v2802_v44 }
 0xb23   :  { %5550 = vpow2.f32 %v4680_v45 }
 0xb25   :  { %v5547_v48 = vpop.eup %5546 }
 0xb26   :  { %v2508_v36 = vadd.f32 1.0, %v5547_v48 }
 0xb28   :  { %5552 = vrcp.f32 %v2508_v36 }
 0xb29   :  { %v5549_v49 = vpop.eup %5548 }
 0xb2a   :  { %v2509_v50 = vadd.f32 1.0, %v5549_v49 }
 0xb2c   :  { %5554 = vrcp.f32 %v2509_v50  ;;  %v3393_v50 = vpop.permute.xlu0 %3392 }
 0xb2d   :  { %v5551_v51 = vpop.eup %5550 }
 0xb2e   :  { %v2810_v52 = vadd.f32 1.0, %v5551_v51 }
 0xb30   :  { %5556 = vrcp.f32 %v2810_v52  ;;  %v3400_v52 = vmul.f32 %v6264_v40, %v3393_v50 }
 0xb32   :  { %v5553_v53 = vpop.eup %5552 }
 0xb33   :  { %v2514_v46 = vmul.f32 %v5553_v53, %v2500_v26 }
 0xb35   :  { %5139 = vmatprep.mubr.msk.f32.mxu1 %vm546_vm3, %v2514_v46 }
 0xb36   :  { %v5555_v54 = vpop.eup %5554 }
 0xb37   :  { %v2515_v57 = vmul.f32 %v5555_v54, %v2501_v47 }
 0xb39   :  { %5140 = vmatmul.mubr.msk.f32.vlgmr.msra.gmra.mrb[20].mxu1 %vm546_vm3, %v2515_v57 }
 0xb3a   :  { %v5557_v56 = vpop.eup %5556  ;;  %5148 = vmatpush3.msra.mxu1 %v6223_v15  ;;  %5149 = vmatprep.mubr.msk.f32.mxu1 %vm5675_vm2, %v5674_v20 }
 0xb3b   :  { %v2816_v58 = vmul.f32 %v5557_v56, %v2802_v44  ;;  %5159 = vmatprep.subr.mxu1 %v5674_v20 }
 0xb3d   :  { %5150 = vmatmul.mubr.msk.f32.vlgmr.msra.gmra.mrb[22].mxu1 %vm96_vm0, %v6011_v29  ;;  %5156 = vmatprep.mubr.msk.f32.mxu0 %vm546_vm3, %v2816_v58 }
 0xb3e   :  { %5160 = vmatpush3.msra.mxu1 %v6228_v35  ;;  %5161 = vmatprep.mubr.msk.f32.mxu1 %vm5675_vm2, %v5674_v20 }
 0xb3f   :  { %5380 = vmatprep.subr.bf16.mxu1 %v6250_v21 }
 0xb41   :  { %5162 = vmatmul.mubr.msk.f32.vlgmr.msra.gmra.mrb[24].mxu1 %vm96_vm0, %v6023_v31 }
 0xb42   :  { %5382 = vmatpush3.bf16.msra.mxu1 %v6250_v21 }
 0xb43   :  { %5181 = vmatprep.subr.mxu1 %v5674_v20 }
 0xc0c   :  { %v5141_v59 = vpop.f32.mrb[20].mxu1 }
 0xc0d   :  { %v2599_v60 = vpop.f32.mrb[21].mxu1 }
 0xc10   :  { %v2782_v29 = vpop.f32.mrb[22].mxu1 }
 0xc11   :  { %v2787_v5 = vadd.f32 %v2782_v29, %v6270_v25  ;;  %v5151_v6 = vpop.f32.mrb[23].mxu1 }
 0xc12   :  { %v3693_v6 = vpop.permute.xlu0 %3692 }
 0xc13   :  { %v2803_v7 = vadd.f32 %v2801_v0, %v2787_v5 }
 0xc14   :  { %v3009_v12 = vpop.f32.mrb[24].mxu1 }
 0xc15   :  { %v4681_v19 = vmul.f32 -1.442695, %v2803_v7  ;;  %v3086_v31 = vadd.f32 %v3009_v12, %v6266_v4  ;;  %v5163_v2 = vpop.f32.mrb[25].mxu1 }
 0xc17   :  { %5558 = vpow2.f32 %v4681_v19  ;;  %v3102_v16 = vadd.f32 %v3100_v18, %v3086_v31  ;;  %v2627_v31 = vpop.permute.xlu0 %2626 }
 0xc19   :  { %v4698_v17 = vmul.f32 -1.442695, %v3102_v16 }
 0xc1b   :  { %5560 = vpow2.f32 %v4698_v17 }
 0xc21   :  { %v5559_v39 = vpop.eup %5558 }
 0xc22   :  { %v2811_v10 = vadd.f32 1.0, %v5559_v39 }
 0xc24   :  { %5562 = vrcp.f32 %v2811_v10 }
 0xc25   :  { %v5561_v22 = vpop.eup %5560 }
 0xc26   :  { %v3110_v23 = vadd.f32 1.0, %v5561_v22 }
 0xc28   :  { %5564 = vrcp.f32 %v3110_v23 }
 0xc2e   :  { %v5563_v38 = vpop.eup %5562 }
 0xc2f   :  { %v2817_v24 = vmul.f32 %v5563_v38, %v2803_v7 }
 0xc31   :  { %5157 = vmatmul.mubr.msk.f32.vlgmr.msra.gmra.mrb[30].mxu0 %vm546_vm3, %v2817_v24  ;;  %v2632_v24 = vpop.permute.xlu0 %2631 }
 0xc32   :  { %v5565_v26 = vpop.eup %5564  ;;  %5165 = vmatpush3.msra.mxu0 %v6223_v15  ;;  %5166 = vmatprep.mubr.msk.f32.mxu0 %vm5675_vm2, %v5674_v20 }
 0xc33   :  { %v3116_v27 = vmul.f32 %v5565_v26, %v3102_v16  ;;  %5176 = vmatprep.subr.mxu0 %v5674_v20 }
 0xc35   :  { %5167 = vmatmul.mubr.msk.f32.vlgmr.msra.gmra.mrb[32].mxu0 %vm96_vm0, %v6041_v63  ;;  %5173 = vmatprep.mubr.msk.f32.mxu1 %vm546_vm3, %v3116_v27  ;;  %v6316_v63 = vld [vmem:[%s6520_s12 + $0x1] ss:$0 sm:$0xff] }
 0xc36   :  { %5177 = vmatpush3.msra.mxu0 %v6228_v35  ;;  %5178 = vmatprep.mubr.msk.f32.mxu0 %vm5675_vm2, %v5674_v20  ;;  %v2605_v28 = vadd.f32 %v5141_v59, %v6316_v63  ;;  %v2600_v30 = vadd.f32 %v6316_v63, %v2599_v60  ;;  %v3398_v59 = vpop.permute.xlu1 %3397 }
 0xc37   :  { %5384 = vmatprep.subr.bf16.mxu0 %v6250_v21 }
 0xc38   :  { %v4673_v32 = vmul.f32 -1.442695, %v2605_v28  ;;  %v4672_v33 = vmul.f32 -1.442695, %v2600_v30 }
 0xc39   :  { %5179 = vmatmul.mubr.msk.f32.vlgmr.msra.gmra.mrb[34].mxu0 %vm96_vm0, %v6053_v1 }
 0xc3a   :  { %5386 = vmatpush3.bf16.msra.mxu0 %v6250_v21  ;;  %5566 = vpow2.f32 %v4673_v32  ;;  %v6326_v7 = vpop.permute.xlu1 %3697 }
 0xc3b   :  { %5198 = vmatprep.subr.mxu0 %v5674_v20  ;;  %5568 = vpow2.f32 %v4672_v33 }
 0xc3e   :  { %v2927_v2 = vpop.permute.xlu1 %2926 }
 0xc42   :  { %v2932_v26 = vpop.permute.xlu1 %2931 }
 0xc44   :  { %v5567_v48 = vpop.eup %5566 }
 0xc45   :  { %v5569_v36 = vpop.eup %5568  ;;  %v2615_v53 = vadd.f32 1.0, %v5567_v48 }
 0xc46   :  { %v2614_v56 = vadd.f32 1.0, %v5569_v36 }
 0xd04   :  { %v5158_v55 = vpop.f32.mrb[30].mxu0 }
 0xd05   :  { %v2905_v1 = vadd.f32 %v5158_v55, %v6316_v63  ;;  %v2899_v47 = vpop.f32.mrb[31].mxu0 }
 0xd06   :  { %v2900_v43 = vadd.f32 %v6316_v63, %v2899_v47 }
 0xd07   :  { %v4689_v62 = vmul.f32 -1.442695, %v2905_v1 }
 0xd08   :  { %v4688_v37 = vmul.f32 -1.442695, %v2900_v43  ;;  %v3082_v41 = vpop.f32.mrb[32].mxu0 }
 0xd09   :  { %5570 = vpow2.f32 %v4689_v62  ;;  %v3087_v44 = vadd.f32 %v3082_v41, %v6270_v25  ;;  %v5168_v45 = vpop.f32.mrb[33].mxu0 }
 0xd0a   :  { %5572 = vpow2.f32 %v4688_v37 }
 0xd0b   :  { %v3103_v49 = vadd.f32 %v3101_v42, %v3087_v44 }
 0xd0c   :  { %v3309_v51 = vpop.f32.mrb[34].mxu0 }
 0xd0d   :  { %v4699_v46 = vmul.f32 -1.442695, %v3103_v49  ;;  %v3386_v54 = vadd.f32 %v3309_v51, %v6266_v4  ;;  %v5180_v57 = vpop.f32.mrb[35].mxu0 }
 0xd0f   :  { %5574 = vpow2.f32 %v4699_v46  ;;  %v3402_v58 = vadd.f32 %v3400_v52, %v3386_v54 }
 0xd10   :  { %5576 = vrcp.f32 %v2615_v53 }
 0xd11   :  { %v4716_v60 = vmul.f32 -1.442695, %v3402_v58  ;;  %5578 = vrcp.f32 %v2614_v56 }
 0xd13   :  { %v5571_v61 = vpop.eup %5570  ;;  %5580 = vpow2.f32 %v4716_v60 }
 0xd14   :  { %v5573_v29 = vpop.eup %5572  ;;  %v2915_v0 = vadd.f32 1.0, %v5571_v61 }
 0xd15   :  { %v2914_v5 = vadd.f32 1.0, %v5573_v29 }
 0xd16   :  { %5582 = vrcp.f32 %v2915_v0 }
 0xd17   :  { %5584 = vrcp.f32 %v2914_v5 }
 0xd19   :  { %v5575_v9 = vpop.eup %5574 }
 0xd1a   :  { %v3111_v12 = vadd.f32 1.0, %v5575_v9  ;;  %v5577_v18 = vpop.eup %5576  ;;  %v3232_v9 = vpop.permute.xlu1 %3231 }
 0xd1b   :  { %v5579_v19 = vpop.eup %5578  ;;  %v2621_v39 = vmul.f32 %v5577_v18, %v2605_v28  ;;  %v3227_v18 = vpop.permute.xlu0 %3226 }
 0xd1c   :  { %5586 = vrcp.f32 %v3111_v12  ;;  %v2620_v22 = vmul.f32 %v5579_v19, %v2600_v30 }
 0xd1d   :  { %v5581_v16 = vpop.eup %5580  ;;  %v2635_v32 = vmul.f32 %v2632_v24, %v2621_v39 }
 0xd1e   :  { %v3410_v17 = vadd.f32 1.0, %v5581_v16  ;;  %v2634_v55 = vmul.f32 %v2627_v31, %v2620_v22 }
 0xd20   :  { %v5583_v10 = vpop.eup %5582  ;;  %5588 = vrcp.f32 %v3410_v17 }
 0xd21   :  { %v5585_v23 = vpop.eup %5584  ;;  %v2921_v38 = vmul.f32 %v5583_v10, %v2905_v1 }
 0xd22   :  { %v2920_v27 = vmul.f32 %v5585_v23, %v2900_v43 }
 0xd23   :  { %v2935_v33 = vmul.f32 %v2932_v26, %v2921_v38 }
 0xd24   :  { %v2934_v47 = vmul.f32 %v2927_v2, %v2920_v27 }
 0xd25   :  { %v2937_v62 = vadd.f32 %v2935_v33, %v2635_v32 }
 0xd26   :  { %v5587_v34 = vpop.eup %5586  ;;  %v2936_v37 = vadd.f32 %v2934_v47, %v2634_v55 }
 0xd27   :  { %v3117_v41 = vmul.f32 %v5587_v34, %v3103_v49 }
 0xd29   :  { %5174 = vmatmul.mubr.msk.f32.vlgmr.msra.gmra.mrb[26].mxu1 %vm546_vm3, %v3117_v41 }
 0xd2a   :  { %v5589_v42 = vpop.eup %5588  ;;  %5182 = vmatpush3.msra.mxu1 %v6223_v15  ;;  %5183 = vmatprep.mubr.msk.f32.mxu1 %vm5675_vm2, %v5674_v20 }
 0xd2b   :  { %v3416_v28 = vmul.f32 %v5589_v42, %v3402_v58  ;;  %5193 = vmatprep.subr.mxu1 %v5674_v20 }
 0xd2d   :  { %5184 = vmatmul.mubr.msk.f32.vlgmr.msra.gmra.mrb[28].mxu1 %vm96_vm0, %v6082_v3  ;;  %5190 = vmatprep.mubr.msk.f32.mxu0 %vm546_vm3, %v3416_v28 }
 0xd2e   :  { %5194 = vmatpush3.msra.mxu1 %v6228_v35  ;;  %5195 = vmatprep.mubr.msk.f32.mxu1 %vm5675_vm2, %v5674_v20  ;;  %v3401_v35 = vmul.f32 %v6264_v40, %v3398_v59 }
 0xd2f   :  { %5388 = vmatprep.subr.bf16.mxu1 %v6250_v21 }
 0xd31   :  { %5196 = vmatmul.mubr.msk.f32.vlgmr.msra.gmra.mrb[30].mxu1 %vm96_vm0, %v6094_v8 }
 0xd32   :  { %5390 = vmatpush3.bf16.msra.mxu1 %v6250_v21  ;;  %v3700_v21 = vmul.f32 %v6264_v40, %v3693_v6 }
 0xdfc   :  { %v5175_v30 = vpop.f32.mrb[26].mxu1 }
 0xdfd   :  { %v3205_v1 = vadd.f32 %v5175_v30, %v6316_v63  ;;  %v3199_v43 = vpop.f32.mrb[27].mxu1 }
 0xdfe   :  { %v3200_v3 = vadd.f32 %v6316_v63, %v3199_v43 }
 0xdff   :  { %v4707_v44 = vmul.f32 -1.442695, %v3205_v1 }
 0xe00   :  { %v4706_v45 = vmul.f32 -1.442695, %v3200_v3  ;;  %v3382_v48 = vpop.f32.mrb[28].mxu1 }
 0xe01   :  { %5590 = vpow2.f32 %v4707_v44  ;;  %v3387_v36 = vadd.f32 %v3382_v48, %v6270_v25  ;;  %v5185_v49 = vpop.f32.mrb[29].mxu1 }
 0xe02   :  { %5592 = vpow2.f32 %v4706_v45 }
 0xe03   :  { %v3403_v50 = vadd.f32 %v3401_v35, %v3387_v36 }
 0xe04   :  { %v3609_v8 = vpop.f32.mrb[30].mxu1 }
 0xe05   :  { %v4717_v51 = vmul.f32 -1.442695, %v3403_v50  ;;  %v3686_v52 = vadd.f32 %v3609_v8, %v6266_v4  ;;  %v5197_v53 = vpop.f32.mrb[31].mxu1  ;;  %v4751_v8 = vld [vmem:[%s6522_s14 + $0x18] sm:$0xff] }
 0xe07   :  { %5594 = vpow2.f32 %v4717_v51  ;;  %v3702_v46 = vadd.f32 %v3700_v21, %v3686_v52  ;;  %v4746_v51 = vld [vmem:[%s6521_s13 + $0x20] sm:$0xff]  ;;  %v4747_v52 = vld [vmem:[%s6521_s13 + $0x28] sm:$0xff] }
 0xe08   :  { %v5395_v53 = vpack.c.bf16 %v4747_v52, %v4746_v51 }
 0xe09   :  { %v4734_v54 = vmul.f32 -1.442695, %v3702_v46 }
 0xe0b   :  { %v5591_v57 = vpop.eup %5590  ;;  %5596 = vpow2.f32 %v4734_v54 }
 0xe0c   :  { %v5593_v56 = vpop.eup %5592  ;;  %v3215_v58 = vadd.f32 1.0, %v5591_v57 }
 0xe0d   :  { %v3214_v59 = vadd.f32 1.0, %v5593_v56 }
 0xe0e   :  { %5598 = vrcp.f32 %v3215_v58 }
 0xe0f   :  { %5600 = vrcp.f32 %v3214_v59 }
 0xe11   :  { %v5595_v60 = vpop.eup %5594 }
 0xe12   :  { %v3411_v61 = vadd.f32 1.0, %v5595_v60 }
 0xe14   :  { %5602 = vrcp.f32 %v3411_v61 }
 0xe15   :  { %v5597_v29 = vpop.eup %5596 }
 0xe16   :  { %v3710_v0 = vadd.f32 1.0, %v5597_v29 }
 0xe18   :  { %v5599_v5 = vpop.eup %5598  ;;  %5604 = vrcp.f32 %v3710_v0 }
 0xe19   :  { %v5601_v6 = vpop.eup %5600  ;;  %v3221_v4 = vmul.f32 %v5599_v5, %v3205_v1 }
 0xe1a   :  { %v3220_v12 = vmul.f32 %v5601_v6, %v3200_v3 }
 0xe1b   :  { %v3235_v19 = vmul.f32 %v3232_v9, %v3221_v4 }
 0xe1c   :  { %v3234_v31 = vmul.f32 %v3227_v18, %v3220_v12 }
 0xe1d   :  { %v3237_v2 = vadd.f32 %v3235_v19, %v2937_v62 }
 0xe1e   :  { %v5603_v16 = vpop.eup %5602  ;;  %v3236_v17 = vadd.f32 %v3234_v31, %v2936_v37 }
 0xe1f   :  { %v3417_v39 = vmul.f32 %v5603_v16, %v3403_v50  ;;  %v4750_v50 = vld [vmem:[%s6522_s14 + $0x10] sm:$0xff] }
 0xe20   :  { %v5391_v21 = vpack.c.bf16 %v4751_v8, %v4750_v50  ;;  %v4769_v8 = vld [vmem:[%s6525_s17 + $0x1] ss:$0 sm:$0xff] }
 0xe21   :  { %5191 = vmatmul.mubr.msk.f32.vlgmr.msra.gmra.mrb[36].mxu0 %vm546_vm3, %v3417_v39 }
 0xe22   :  { %v5605_v10 = vpop.eup %5604  ;;  %5199 = vmatpush3.msra.mxu0 %v6223_v15  ;;  %5200 = vmatprep.mubr.msk.f32.mxu0 %vm5675_vm2, %v5674_v20  ;;  %v3701_v15 = vmul.f32 %v6264_v40, %v6326_v7  ;;  %v3532_v7 = vpop.permute.xlu1 %3531 }
 0xe23   :  { %v3716_v22 = vmul.f32 %v5605_v10, %v3702_v46  ;;  %5392 = vmatprep.subr.bf16.mxu0 %v5391_v21  ;;  %v4760_v10 = vld [vmem:[%s6524_s16 + $0x40] sm:$0xff] }
 0xe25   :  { %5201 = vmatmul.mubr.msk.f32.vlgmr.msra.gmra.mrb[38].mxu0 %vm96_vm0, %v6113_v11  ;;  %5207 = vmatprep.mubr.msk.f32.mxu1 %vm546_vm3, %v3716_v22  ;;  %v4761_v22 = vld [vmem:[%s6524_s16 + $0x48] sm:$0xff] }
 0xe26   :  { %5394 = vmatpush3.bf16.msra.mxu0 %v5391_v21  ;;  %v3832_v9 = vpop.permute.xlu1 %3831 }
 0xe27   :  { %5396 = vmatprep.subr.bf16.mxu0 %v5395_v53 }
 0xef4   :  { %v5192_v23 = vpop.f32.mrb[36].mxu0 }
 0xef5   :  { %v3505_v38 = vadd.f32 %v5192_v23, %v6316_v63  ;;  %v3499_v24 = vpop.f32.mrb[37].mxu0  ;;  %v5403_v23 = vpack.c.bf16 %v4761_v22, %v4760_v10  ;;  %v5677_v22 = vmov 0.0|0.0  }
 0xef6   :  { %v3500_v26 = vadd.f32 %v6316_v63, %v3499_v24  ;;  %v4763_v24 = vld [vmem:[%s6524_s16 + $0x58] sm:$0xff] }
 0xef7   :  { %v4725_v27 = vmul.f32 -1.442695, %v3505_v38  ;;  %5404 = vmatprep.subr.bf16.mxu1 %v5403_v23 }
 0xef8   :  { %v4724_v32 = vmul.f32 -1.442695, %v3500_v26  ;;  %v3682_v33 = vpop.f32.mrb[38].mxu0 }
 0xef9   :  { %5606 = vpow2.f32 %v4725_v27  ;;  %v3687_v55 = vadd.f32 %v3682_v33, %v6270_v25  ;;  %v5202_v47 = vpop.f32.mrb[39].mxu0  ;;  %v3527_v25 = vpop.permute.xlu0 %3526  ;;  %v4764_v27 = vld [vmem:[%s6524_s16 + $0x60] sm:$0xff] }
 0xefa   :  { %5608 = vpow2.f32 %v4724_v32  ;;  %v4765_v32 = vld [vmem:[%s6524_s16 + $0x68] sm:$0xff] }
 0xefb   :  { %v3703_v11 = vadd.f32 %v3701_v15, %v3687_v55  ;;  %v5411_v33 = vpack.c.bf16 %v4765_v32, %v4764_v27  ;;  %v4766_v15 = vld [vmem:[%s6524_s16 + $0x70] sm:$0xff]  ;;  %v4767_v55 = vld [vmem:[%s6524_s16 + $0x78] sm:$0xff] }
 0xefc   :  { %v5415_v47 = vpack.c.bf16 %v4767_v55, %v4766_v15 }
 0xefd   :  { %v4735_v62 = vmul.f32 -1.442695, %v3703_v11  ;;  %v3827_v18 = vpop.permute.xlu0 %3826 }
 0xeff   :  { %5610 = vpow2.f32 %v4735_v62  ;;  %v4127_v62 = vld [vmem:[%s6526_s18 + $0x8] sm:$0xff] }
 0xf01   :  { %v4327_v55 = vpop.permute.xlu0 %4326 }
 0xf03   :  { %v5607_v34 = vpop.eup %5606 }
 0xf04   :  { %v5609_v37 = vpop.eup %5608  ;;  %v3515_v41 = vadd.f32 1.0, %v5607_v34 }
 0xf05   :  { %v3514_v42 = vadd.f32 1.0, %v5609_v37  ;;  %v4757_v37 = vld [vmem:[%s6523_s15 + $0x1] ss:$0 sm:$0xff]  ;;  %s6567_s15 = sld [smem:[#allocation16_spill]] }
 0xf06   :  { %5612 = vrcp.f32 %v3515_v41 }
 0xf07   :  { %5614 = vrcp.f32 %v3514_v42 }
 0xf09   :  { %v5611_v28 = vpop.eup %5610 }
 0xf0a   :  { %v3711_v30 = vadd.f32 1.0, %v5611_v28 }
 0xf0c   :  { %5616 = vrcp.f32 %v3711_v30 }
 0xf10   :  { %v5613_v1 = vpop.eup %5612 }
 0xf11   :  { %v5615_v43 = vpop.eup %5614  ;;  %v3521_v40 = vmul.f32 %v5613_v1, %v3505_v38  ;;  %v4762_v38 = vld [vmem:[%s6524_s16 + $0x50] sm:$0xff] }
 0xf12   :  { %v3520_v3 = vmul.f32 %v5615_v43, %v3500_v26  ;;  %v5407_v26 = vpack.c.bf16 %v4763_v24, %v4762_v38  ;;  %v4777_v24 = vld [vmem:[%s6567_s15] ss:$0 sm:$0xff] }
 0xf13   :  { %v3535_v44 = vmul.f32 %v3532_v7, %v3521_v40 }
 0xf14   :  { %v3534_v45 = vmul.f32 %v3527_v25, %v3520_v3 }
 0xf15   :  { %v3537_v48 = vadd.f32 %v3535_v44, %v3237_v2  ;;  %v4749_v2 = vld [vmem:[%s6521_s13 + $0x38] sm:$0xff] }
 0xf16   :  { %v5617_v35 = vpop.eup %5616  ;;  %v3536_v36 = vadd.f32 %v3534_v45, %v3236_v17 }
 0xf17   :  { %v3717_v49 = vmul.f32 %v5617_v35, %v3703_v11  ;;  %v4126_v11 = vld [vmem:[%s6526_s18] sm:$0xff] }
 0xf18   :  { %v5419_v34 = vpack.c.bf16 %v4127_v62, %v4126_v11 }
 0xf19   :  { %5208 = vmatmul.mubr.msk.f32.vlgmr.msra.gmra.mrb[32].mxu1 %vm546_vm3, %v3717_v49  ;;  %v4129_v49 = vld [vmem:[%s6526_s18 + $0x18] sm:$0xff] }
 0xf1a   :  { %5406 = vmatpush3.bf16.msra.mxu1 %v5403_v23  ;;  %v4352_v23 = vld [vmem:[%s6530_s22 + $0x10] sm:$0xff] }
 0xf1b   :  { %5408 = vmatprep.subr.bf16.mxu1 %v5407_v26 }
 0xf1e   :  { %5410 = vmatpush3.bf16.msra.mxu1 %v5407_v26 }
 0xf1f   :  { %5412 = vmatprep.subr.bf16.mxu1 %v5411_v33 }
 0xf22   :  { %5414 = vmatpush3.bf16.msra.mxu1 %v5411_v33  ;;  %v4332_v33 = vpop.permute.xlu1 %4331 }
 0xf23   :  { %5416 = vmatprep.subr.bf16.mxu1 %v5415_v47 }
 0xf26   :  { %5418 = vmatpush3.bf16.msra.mxu1 %v5415_v47 }
 0xfec   :  { %v5209_v46 = vpop.f32.mrb[32].mxu1 }
 0xfed   :  { %v3805_v54 = vadd.f32 %v5209_v46, %v6316_v63  ;;  %v3799_v57 = vpop.f32.mrb[33].mxu1 }
 0xfee   :  { %v3800_v56 = vadd.f32 %v6316_v63, %v3799_v57  ;;  %v4748_v63 = vld [vmem:[%s6521_s13 + $0x30] sm:$0xff]  ;;  %v4232_v57 = vld [vmem:[%s6528_s20] sm:$0xff] }
 0xfef   :  { %v4743_v58 = vmul.f32 -1.442695, %v3805_v54  ;;  %v5399_v39 = vpack.c.bf16 %v4749_v2, %v4748_v63 }
 0xff0   :  { %v4742_v59 = vmul.f32 -1.442695, %v3800_v56 }
 0xff1   :  { %5618 = vpow2.f32 %v4743_v58 }
 0xff2   :  { %5620 = vpow2.f32 %v4742_v59 }
 0xffb   :  { %v5619_v60 = vpop.eup %5618 }
 0xffc   :  { %v5621_v61 = vpop.eup %5620  ;;  %v3815_v29 = vadd.f32 1.0, %v5619_v60  ;;  %v4772_v60 = vld [vmem:[%s6527_s19] ss:$0 sm:$0xff] }
 0xffd   :  { %v3814_v0 = vadd.f32 1.0, %v5621_v61 }
 0xffe   :  { %5622 = vrcp.f32 %v3815_v29 }
 0xfff   :  { %5624 = vrcp.f32 %v3814_v0 }
0x1008   :  { %v5623_v5 = vpop.eup %5622 }
0x1009   :  { %v5625_v6 = vpop.eup %5624  ;;  %v3821_v4 = vmul.f32 %v5623_v5, %v3805_v54 }
0x100a   :  { %v3820_v12 = vmul.f32 %v5625_v6, %v3800_v56  ;;  %v4233_v56 = vld [vmem:[%s6528_s20 + $0x8] sm:$0xff] }
0x100b   :  { %v3835_v19 = vmul.f32 %v3832_v9, %v3821_v4  ;;  %v5427_v58 = vpack.c.bf16 %v4233_v56, %v4232_v57 }
0x100c   :  { %v3834_v31 = vmul.f32 %v3827_v18, %v3820_v12 }
0x100d   :  { %v3837_v16 = vadd.f32 %v3835_v19, %v3537_v48  ;;  %5428 = vmatprep.subr.bf16.mxu1 %v5427_v58 }
0x100e   :  { %v3836_v17 = vadd.f32 %v3834_v31, %v3536_v36  ;;  %v4128_v36 = vld [vmem:[%s6526_s18 + $0x10] sm:$0xff] }
0x100f   :  { %v5423_v50 = vpack.c.bf16 %v4129_v49, %v4128_v36  ;;  %v4446_v49 = vld [vmem:[%s6532_s24 + $0x10] sm:$0xff] }
0x1010   :  { %5214 = vmatprep.mubr.msk.f32.mxu0 %vm546_vm3, %v3836_v17  ;;  %v4350_v17 = vld [vmem:[%s6530_s22] sm:$0xff] }
0x1011   :  { %5215 = vmatmul.mubr.msk.f32.vlgmr.msra.gmra.mrb[40].mxu0 %vm546_vm3, %v3837_v16 }
0x1012   :  { %5398 = vmatpush3.bf16.msra.mxu0 %v5395_v53  ;;  %5225 = vmatprep.mubr.msk.f32.mxu0 %vm189_vm1, %v6208_v13 }
0x1013   :  { %5400 = vmatprep.subr.bf16.mxu0 %v5399_v39 }
0x1016   :  { %5402 = vmatpush3.bf16.msra.mxu0 %v5399_v39  ;;  %v4351_v39 = vld [vmem:[%s6530_s22 + $0x8] sm:$0xff] }
0x1017   :  { %5420 = vmatprep.subr.bf16.mxu0 %v5419_v34  ;;  %v5436_v10 = vpack.c.bf16 %v4351_v39, %v4350_v17 }
0x1019   :  { %5226 = vmatmul.mubr.msk.f32.vlgmr.msra.gmra.mrb[40].mxu0 %vm189_vm1, %v6211_v14 }
0x101a   :  { %5422 = vmatpush3.bf16.msra.mxu0 %v5419_v34 }
0x101b   :  { %5424 = vmatprep.subr.bf16.mxu0 %v5423_v50 }
0x101e   :  { %5426 = vmatpush3.bf16.msra.mxu0 %v5423_v50  ;;  %v4447_v50 = vld [vmem:[%s6532_s24 + $0x18] sm:$0xff] }
0x101f   :  { %5435 = vmatprep.subr.bf16.mxu0 %v5677_v22 }
0x10ec   :  { %v5227_v41 = vpop.f32.mrb[40].mxu0 }
0x10ed   :  { %v4011_v42 = vadd.f32 %v5227_v41, %v4757_v37  ;;  %v3993_v28 = vpop.f32.mrb[41].mxu0 }
0x10ee   :  { %v4010_v30 = vadd.f32 %v4757_v37, %v3993_v28 }
0x10ef   :  { %v4759_v1 = vmul.f32 -1.442695, %v4011_v42 }
0x10f0   :  { %v4758_v43 = vmul.f32 -1.442695, %v4010_v30 }
0x10f1   :  { %5626 = vpow2.f32 %v4759_v1 }
0x10f2   :  { %5628 = vpow2.f32 %v4758_v43 }
0x10fb   :  { %v5627_v40 = vpop.eup %5626 }
0x10fc   :  { %v5629_v7 = vpop.eup %5628  ;;  %v4019_v3 = vadd.f32 1.0, %v5627_v40 }
0x10fd   :  { %v4018_v25 = vadd.f32 1.0, %v5629_v7 }
0x10fe   :  { %5630 = vrcp.f32 %v4019_v3 }
0x10ff   :  { %5632 = vrcp.f32 %v4018_v25 }
0x1108   :  { %v5631_v44 = vpop.eup %5630 }
0x1109   :  { %v5633_v45 = vpop.eup %5632  ;;  %v4025_v35 = vmul.f32 %v5631_v44, %v4011_v42 }
0x110a   :  { %v4024_v48 = vmul.f32 %v5633_v45, %v4010_v30 }
0x110c   :  { %5244 = vmatprep.mubr.msk.f32.mxu1 %vm2070_vm4, %v4024_v48  ;;  %v4444_v48 = vld [vmem:[%s6532_s24] sm:$0xff] }
0x110d   :  { %5245 = vmatmul.mubr.msk.f32.vlgmr.msra.gmra.mrb[34].mxu1 %vm2070_vm4, %v4025_v35  ;;  %v4445_v35 = vld [vmem:[%s6532_s24 + $0x8] sm:$0xff] }
0x110e   :  { %5430 = vmatpush3.bf16.msra.mxu1 %v5427_v58  ;;  %v5442_v36 = vpack.c.bf16 %v4445_v35, %v4444_v48 }
0x11e0   :  { %v5246_v21 = vpop.f32.mrb[34].mxu1 }
0x11e1   :  { %v4121_v51 = vadd.f32 %v5246_v21, %v4769_v8  ;;  %v4115_v52 = vpop.f32.mrb[35].mxu1  ;;  %v4780_v21 = vld [vmem:[%s6531_s23] ss:$0 sm:$0xff]  ;;  %s5678_s23 = smov [#allocation2]  }
0x11e2   :  { %v4116_v53 = vadd.f32 %v4769_v8, %v4115_v52  ;;  %v5445_v8 = vpack.c.bf16 %v4447_v50, %v4446_v49 }
0x11e3   :  { %v4125_v54 = vadd.f32 %v4121_v51, %v6211_v14  ;;  %v4235_v14 = vld [vmem:[%s6528_s20 + $0x18] sm:$0xff] }
0x11e4   :  { %v4124_v46 = vadd.f32 %v4116_v53, %v6208_v13  ;;  %v4234_v13 = vld [vmem:[%s6528_s20 + $0x10] sm:$0xff] }
0x11e5   :  { %v5431_v59 = vpack.c.bf16 %v4235_v14, %v4234_v13  ;;  %v4783_v13 = vld [vmem:[%s6533_s25] ss:$0 sm:$0xff]  ;;  %s4550_s25 = sshll.u32 %s5678_s23, 4  ;;  %s4551_s25 = int_to_ptr.vmem [resolvable:$true] %s4550_s25 }
0x11e6   :  { %5255 = vmatprep.mubr.msk.f32.mxu0 %vm189_vm1, %v4124_v46  ;;  %s5650_s0 = scalar_lea.vmem %s4551_s25, 32  ;;  %p5655_p1 = scmp.lt.s32.totalorder %s4551_s25, %s4551_s25 }
0x11e7   :  { %5256 = vmatmul.mubr.msk.f32.vlgmr.msra.gmra.mrb[42].mxu0 %vm189_vm1, %v4125_v54  ;;  %5432 = vmatprep.subr.bf16.mxu1 %v5431_v59  ;;  %p5651_p0 = scmp.ne.s32.totalorder %s4551_s25, %s5650_s0  ;;  %p5656_p2 = scmp.lt.s32.totalorder %s5650_s0, %s5650_s0 }
0x11e8   :  { %5277 = vmatprep.mubr.msk.f32.mxu0 %vm5675_vm2, %v5674_v20  ;;  %5434 = vmatpush3.bf16.msra.mxu1 %v5431_v59 }
0x11e9   :  { %5441 = vmatprep.subr.bf16.mxu1 %v5677_v22  ;;  %5437 = vmatpush3.bf16.msra.mxu0 %v5436_v10  ;;  %p5657_p3 = por %p5656_p2, %p5655_p1 }
0x11ea   :  { %5438 = vmatprep.subr.bf16.mxu0 %v5677_v22 }
0x11eb   :  { %p5658_p4 = pnand %p5657_p3, %p5651_p0 }
0x12ba   :  { %v5257_v61 = vpop.f32.mrb[42].mxu0 }
0x12bb   :  { %v4215_v29 = vadd.f32 %v5257_v61, %v4772_v60  ;;  %v4209_v0 = vpop.f32.mrb[43].mxu0 }
0x12bc   :  { %v4210_v5 = vadd.f32 %v4772_v60, %v4209_v0 }
0x12bd   :  { %v4776_v6 = vmul.f32 -1.442695, %v4215_v29 }
0x12be   :  { %v4775_v4 = vmul.f32 -1.442695, %v4210_v5 }
0x12bf   :  { %5634 = vpow2.f32 %v4776_v6 }
0x12c0   :  { %5636 = vpow2.f32 %v4775_v4 }
0x12c9   :  { %v5635_v9 = vpop.eup %5634 }
0x12ca   :  { %v5637_v12 = vpop.eup %5636  ;;  %v4225_v18 = vadd.f32 1.0, %v5635_v9 }
0x12cb   :  { %v4224_v19 = vadd.f32 1.0, %v5637_v12 }
0x12cc   :  { %5638 = vrcp.f32 %v4225_v18 }
0x12cd   :  { %5640 = vrcp.f32 %v4224_v19 }
0x12d6   :  { %v5639_v31 = vpop.eup %5638 }
0x12d7   :  { %v5641_v63 = vpop.eup %5640  ;;  %v4231_v16 = vmul.f32 %v5639_v31, %v4215_v29 }
0x12d8   :  { %v4230_v2 = vmul.f32 %v5641_v63, %v4210_v5 }
0x12da   :  { %5266 = vmatprep.mubr.msk.f32.mxu1 %vm189_vm1, %v4230_v2 }
0x12db   :  { %5267 = vmatmul.mubr.msk.f32.vlgmr.msra.gmra.mrb[36].mxu1 %vm189_vm1, %v4231_v16 }
0x12dc   :  { %5288 = vmatprep.mubr.msk.f32.mxu1 %vm5675_vm2, %v5674_v20  ;;  %v4353_v20 = vld [vmem:[%s6530_s22 + $0x18] sm:$0xff]  ;;  %5443 = vmatpush3.bf16.msra.mxu1 %v5442_v36 }
0x12dd   :  { %v5439_v38 = vpack.c.bf16 %v4353_v20, %v4352_v23  ;;  %5444 = vmatprep.subr.bf16.mxu1 %v5677_v22 }
0x12df   :  { %5440 = vmatpush3.bf16.msra.mxu0 %v5439_v38 }
0x12e0   :  { %5446 = vmatpush3.bf16.msra.mxu1 %v5445_v8 }
0x13ae   :  { %v5268_v26 = vpop.f32.mrb[36].mxu1 }
0x13af   :  { %v4321_v27 = vadd.f32 %v5268_v26, %v4777_v24  ;;  %v4315_v32 = vpop.f32.mrb[37].mxu1 }
0x13b0   :  { %v4316_v15 = vadd.f32 %v4777_v24, %v4315_v32 }
0x13b1   :  { %v4335_v47 = vmul.f32 %v4332_v33, %v4321_v27 }
0x13b2   :  { %v4334_v11 = vmul.f32 %v4327_v55, %v4316_v15 }
0x13b3   :  { %v4343_v62 = vsel %vm189_vm1, %v4335_v47, 0.0 }
0x13b4   :  { %v4344_v34 = vrot.slane %v4343_v62, 4  ;;  %v4336_v37 = vsel %vm189_vm1, %v4334_v11, 0.0 }
0x13b5   :  { %v4337_v41 = vrot.slane %v4336_v37, 4 }
0x13b6   :  { %v4345_v42 = vadd.f32 %v4344_v34, %v4343_v62 }
0x13b7   :  { %v4338_v28 = vadd.f32 %v4337_v41, %v4336_v37 }
0x13b8   :  { %v4346_v30 = vrot.slane %v4345_v42, 2 }
0x13b9   :  { %v4339_v1 = vrot.slane %v4338_v28, 2 }
0x13ba   :  { %v4347_v43 = vadd.f32 %v4346_v30, %v4345_v42 }
0x13bb   :  { %v4340_v40 = vadd.f32 %v4339_v1, %v4338_v28 }
0x13bc   :  { %v4348_v7 = vrot.slane %v4347_v43, 1 }
0x13bd   :  { %v4341_v3 = vrot.slane %v4340_v40, 1 }
0x13be   :  { %v4349_v25 = vadd.f32 %v4348_v7, %v4347_v43 }
0x13bf   :  { %v4342_v44 = vadd.f32 %v4341_v3, %v4340_v40 }
0x13c1   :  { %v4364_v45 = vsel %vm4363_vm5, %v4349_v25, %v4342_v44 }
0x13c2   :  { %5278 = vmatmul.mubr.msk.f32.vlgmr.msra.gmra.mrb[44].mxu0 %vm189_vm1, %v4364_v45 }
0x1495   :  { %v4433_v51 = vpop.f32.mrb[44].mxu0 }
0x1496   :  { %v4434_v52 = vadd.f32 %v4780_v21, %v4433_v51  ;;  %v5279_v53 = vpop.f32.mrb[45].mxu0 }
0x1498   :  { %v4782_v46 = vmul.f32 -1.442695, %v4434_v52 }
0x149a   :  { %5642 = vpow2.f32 %v4782_v46 }
0x14a4   :  { %v5643_v54 = vpop.eup %5642 }
0x14a5   :  { %v4440_v57 = vadd.f32 1.0, %v5643_v54 }
0x14a7   :  { %5644 = vrcp.f32 %v4440_v57 }
0x14b1   :  { %v5645_v56 = vpop.eup %5644 }
0x14b2   :  { %v4443_v58 = vmul.f32 %v5645_v56, %v4434_v52 }
0x14b4   :  { %5289 = vmatmul.mubr.msk.f32.vlgmr.msra.gmra.mrb[38].mxu1 %vm189_vm1, %v4443_v58 }
0x1587   :  { %v4524_v14 = vpop.f32.mrb[38].mxu1 }
0x1588   :  { %v4525_v59 = vadd.f32 %v4783_v13, %v4524_v14  ;;  %v5290_v60 = vpop.f32.mrb[39].mxu1 }
0x158a   :  { %v4528_v61 = vmul.f32 %v4525_v59, %v4525_v59 }
0x158c   :  { %v4530_v29 = vsel %vm4529_vm6, %v4528_v61, 0.0 }
0x158d   :  { %4531 = vadd.xlane.f32.xlu0 %v4530_v29 }
0x161a   :  { %v4532_v0 = vpop.xlane.xlu0 %4531 }
0x161b   :  { %5646 = vrsqrt.f32 %v4532_v0  ;;  %vm4535_vm7 = vcmp.eq.f32.partialorder %v4532_v0, inf  ;;  %v4538_v4 = vand.u32 2147483648, %v4532_v0  ;;  %vm4537_vm8 = vcmp.eq.f32.partialorder %v4532_v0, 0.0 }
0x1625   :  { %v5647_v5 = vpop.eup %5646 }
0x1626   :  { %v4534_v6 = vmul.f32 %v5647_v5, %v4532_v0 }
0x1628   :  { %v4536_v9 = vsel %vm4535_vm7, %v4532_v0, %v4534_v6 }
0x1629   :  { %v4539_v12 = vsel %vm4537_vm8, %v4538_v4, %v4536_v9 }
0x162a   :  { %v4540_v18 = vmax.f32 %v4539_v12, 1e-08 }
0x162c   :  { %5648 = vrcp.f32 %v4540_v18 }
0x1636   :  { %v5649_v19 = vpop.eup %5648 }
0x1637   :  { %v4542_v31 = vmul.f32 %v5649_v19, %v4525_v59 }
0x1639   :  { %4543 = vst.msk [vmem:[#allocation2] sm:$0x3] %vm4529_vm6, %v4542_v31 }
0x163a   :  { %5661 = shalt.err (!%p5658_p4)
}
0x163b   :  { %s5662_s5 = scalar_lea.hbm %s6534_s26, 32 }
0x163c   :  { %p5663_p5 = scmp.ne.s32.totalorder %s6534_s26, %s5662_s5  ;;  %p5666_p6 = scmp.lt.u32.totalorder %s5662_s5, %s6534_s26 }
0x163e   :  { %p5668_p7 = pnand %p5666_p6, %p5663_p5 }
0x1640   :  { %5671 = shalt.err (!%p5668_p7)
}
0x1641   :  { %4553 = dma.vmem_to_hbm [thread:$0]  %s4551_s25, 32, %s6534_s26, [#allocation3]  }
0x1642   :  { %5672 = dma.done.wait [#allocation3], 32  }
0x1643   :  { %5673 = vsyncadd [#allocation3], 4294967264 }
0x1644   :  { %4557 = vsyncpa [#allocation3], 1 }

</bundles_post_ra>
